<compile_context>
chip_gen: v6e
topology: v6e:2x2x1
jax: 0.10.0
libtpu: 0.0.40
codegen_flags: <defaults>
</compile_context>

<pallas_src>
import functools

import jax
import jax.numpy as jnp
from jax.experimental import pallas as pl
from jax.experimental.pallas import tpu as pltpu


def _round_up(x: int, m: int) -> int:
    return ((x + m - 1) // m) * m


def _vmem_budget_bytes() -> int:
    """Conservative per-kernel VMEM budget for the current TPU generation."""
    try:
        phys = int(pltpu.get_tpu_info().vmem_capacity_bytes)
    except Exception:
        phys = 64 * 1024 * 1024  # smallest per-core VMEM (v7x) as a safe fallback
    # Use at most 3/4 of physical, capped at 96 MiB (fits v5e/v6e comfortably).
    return min((phys * 3) // 4, 96 * 1024 * 1024)


def _choose_tq(n_q_pad: int, n_k_pad: int, vmem_budget: int) -> int:
    """Largest query tile whose double-buffered working set fits the budget."""
    # Per tile (per buffer), f32: attn (tq, n_k_pad) + lane-padded q column
    # (tq x 128 words) + lane-padded out column (tq x 128 words).  Keep the
    # double-buffered total under half the budget for Mosaic scratch headroom.
    bytes_per_row = 4 * (n_k_pad + 128 + 128)
    tq = (vmem_budget // 2) // (2 * bytes_per_row)
    tq = max(8, min(tq, 1024))
    tq = (tq // 8) * 8
    return min(tq, n_q_pad)


def nw_kernel(w_ref, q_ref, k_ref, v_ref, out_ref, attn_ref, *, n_k: int):
    """One (TQ, n_k_pad) tile: scores -> masked softmax -> weighted value sum."""
    w = w_ref[0, 0]                      # scalar from SMEM
    wsq = -0.5 * w * w                   # folded constant (computed once)

    q = q_ref[...]                       # (TQ, 1)       queries on sublanes
    k_row = k_ref[...]                   # (1, n_k_pad)  keys on lanes
    v_row = v_ref[...]                   # (1, n_k_pad)  values on lanes

    diff = q - k_row                     # (TQ, n_k_pad) broadcast
    scores = diff * diff * wsq

    # Mask padded key lanes with a large-negative sentinel (exp underflows to
    # exactly 0), so the softmax normalization ignores the phantom keys.
    n_k_pad = scores.shape[-1]
    if n_k < n_k_pad:
        lane = jax.lax.broadcasted_iota(jnp.int32, scores.shape, 1)
        scores = jnp.where(lane < n_k, scores, jnp.float32(-1e30))

    # Numerically-stable softmax over the key (lane) axis.
    m = jnp.max(scores, axis=-1, keepdims=True)
    e = jnp.exp(scores - m)
    denom = jnp.sum(e, axis=-1, keepdims=True)

    # EUP approximate reciprocal + one Newton-Raphson refinement (~f32 exact).
    r = pl.reciprocal(denom, approx=True)
    r = r * (2.0 - denom * r)

    attn_ref[...] = e * r                # lane-dense (TQ, n_k_pad) store

    # VPU multiply + XLU lane reduction on the unnormalized weights; scale by r
    # afterwards so the reduction does not wait on the reciprocal broadcast.
    out_ref[...] = jnp.sum(e * v_row, axis=-1, keepdims=True) * r


def nw_forward(w, q, k, v, *, tq=None):
    """w: (1,), q: (n_q,), k: (n_k,), v: (n_k,)
    returns (output (n_q,), attention_weights (n_q, n_k))."""
    n_q = int(q.shape[0])
    n_k = int(k.shape[0])

    n_q_pad = _round_up(n_q, 8)          # sublane alignment only (no tile pad)
    n_k_pad = _round_up(n_k, 128)        # lane-dense attn stores

    vmem_budget = _vmem_budget_bytes()
    if tq is None:
        tq = _choose_tq(n_q_pad, n_k_pad, vmem_budget)
    tq = max(8, min(_round_up(int(tq), 8), n_q_pad))

    grid = (pl.cdiv(n_q_pad, tq),)       # partial edge block; writes are masked

    q2 = jnp.pad(q.astype(jnp.float32), (0, n_q_pad - n_q)).reshape(n_q_pad, 1)
    k2 = jnp.pad(k.astype(jnp.float32), (0, n_k_pad - n_k)).reshape(1, n_k_pad)
    v2 = jnp.pad(v.astype(jnp.float32), (0, n_k_pad - n_k)).reshape(1, n_k_pad)
    w2 = w.reshape(1, 1).astype(jnp.float32)

    out, attn = pl.pallas_call(
        functools.partial(nw_kernel, n_k=n_k),
        grid=grid,
        out_shape=(
            jax.ShapeDtypeStruct((n_q_pad, 1), jnp.float32),
            jax.ShapeDtypeStruct((n_q_pad, n_k_pad), jnp.float32),
        ),
        in_specs=[
            pl.BlockSpec(memory_space=pltpu.MemorySpace.SMEM),    # w scalar
            pl.BlockSpec((tq, 1), lambda i: (i, 0)),              # q tile
            pl.BlockSpec((1, n_k_pad), lambda i: (0, 0)),         # k (resident)
            pl.BlockSpec((1, n_k_pad), lambda i: (0, 0)),         # v (resident)
        ],
        out_specs=(
            pl.BlockSpec((tq, 1), lambda i: (i, 0)),              # output tile
            pl.BlockSpec((tq, n_k_pad), lambda i: (i, 0)),        # attn tile
        ),
        compiler_params=pltpu.CompilerParams(
            dimension_semantics=("parallel",),
            vmem_limit_bytes=vmem_budget,
        ),
    )(w2, q2, k2, v2)

    return out[:n_q, 0], attn[:n_q, :n_k]


def nw_reference(w, q, k, v):
    """Pure-JAX reference mirroring the PyTorch forward exactly."""
    n_k = k.shape[-1]
    q_repeat = jnp.repeat(q, n_k).reshape(-1, n_k)
    scores = -(((q_repeat - k) * w[0]) ** 2) / 2
    attn = jax.nn.softmax(scores, axis=1)
    out = jnp.sum(attn * v[None, :], axis=-1)
    return out, attn


if __name__ == "__main__":
    key = jax.random.PRNGKey(0)
    k_w, k_q, k_k, k_v = jax.random.split(key, 4)

    # Small shapes: n_q deliberately not a multiple of the tile (600 = 2*256 +
    # 88) to exercise the cdiv partial-edge-block path, and n_k=50 < 128 to
    # exercise the lane padding + masking path.
    n_q, n_k = 600, 50

    # deterministic parameter init (mirrors torch.rand((1,)))
    w = jax.random.uniform(k_w, (1,), dtype=jnp.float32)

    q = jnp.sort(jax.random.uniform(k_q, (n_q,), dtype=jnp.float32) * 5.0)
    k = jnp.sort(jax.random.uniform(k_k, (n_k,), dtype=jnp.float32) * 5.0)
    v = 2.0 * jnp.sin(k) + 0.1 * jax.random.normal(k_v, (n_k,), dtype=jnp.float32)

    out, attn = nw_forward(w, q, k, v, tq=256)
    out = jax.block_until_ready(out)
    attn = jax.block_until_ready(attn)

    ref_out, ref_attn = nw_reference(w, q, k, v)

    assert out.shape == (n_q,)
    assert attn.shape == (n_q, n_k)
    assert jnp.allclose(attn, ref_attn, atol=1e-5, rtol=1e-5)
    assert jnp.allclose(out, ref_out, atol=1e-5, rtol=1e-5)

    print("KERNEL_OK")
</pallas_src>

<mosaic_0001>
module attributes {stable_mosaic.version = 11 : i64} {
  func.func @nw_kernel(%arg0: i32, %arg1: memref<1x1xf32, #tpu.memory_space<smem>>, %arg2: memref<256x1xf32, #tpu.memory_space<vmem>>, %arg3: memref<1x128xf32, #tpu.memory_space<vmem>>, %arg4: memref<1x128xf32, #tpu.memory_space<vmem>>, %arg5: memref<256x1xf32, #tpu.memory_space<vmem>>, %arg6: memref<256x128xf32, #tpu.memory_space<vmem>>) attributes {dimension_semantics = [#tpu.dimension_semantics<parallel>], iteration_bounds = array<i64: 3>, scalar_prefetch = 0 : i64, scratch_operands = 0 : i64, tpu.core_type = #tpu.core_type<tc>, window_params = [{transform_indices = @transform_0, window_bounds = array<i64: 1, 1>}, {transform_indices = @transform_1, window_bounds = array<i64: 256, 1>}, {pipeline_mode = #tpu.pipeline_mode<synchronous>, transform_indices = @transform_2, window_bounds = array<i64: 1, 128>}, {pipeline_mode = #tpu.pipeline_mode<synchronous>, transform_indices = @transform_3, window_bounds = array<i64: 1, 128>}, {transform_indices = @transform_4, window_bounds = array<i64: 256, 1>}, {transform_indices = @transform_5, window_bounds = array<i64: 256, 128>}]} {
    %c0 = arith.constant 0 : index
    %c0_0 = arith.constant 0 : index
    %0 = memref.load %arg1[%c0, %c0_0] : memref<1x1xf32, #tpu.memory_space<smem>>
    %cst = arith.constant -5.000000e-01 : f32
    %1 = arith.mulf %cst, %0 : f32
    %2 = arith.mulf %1, %0 : f32
    %c0_1 = arith.constant 0 : index
    %c0_2 = arith.constant 0 : index
    %3 = vector.load %arg2[%c0_1, %c0_2] : memref<256x1xf32, #tpu.memory_space<vmem>>, vector<256x1xf32>
    %c0_3 = arith.constant 0 : index
    %c0_4 = arith.constant 0 : index
    %4 = vector.load %arg3[%c0_3, %c0_4] : memref<1x128xf32, #tpu.memory_space<vmem>>, vector<1x128xf32>
    %c0_5 = arith.constant 0 : index
    %c0_6 = arith.constant 0 : index
    %5 = vector.load %arg4[%c0_5, %c0_6] : memref<1x128xf32, #tpu.memory_space<vmem>>, vector<1x128xf32>
    %6 = vector.broadcast %3 : vector<256x1xf32> to vector<256x128xf32>
    %7 = vector.broadcast %4 : vector<1x128xf32> to vector<256x128xf32>
    %8 = arith.subf %6, %7 : vector<256x128xf32>
    %9 = arith.mulf %8, %8 : vector<256x128xf32>
    %10 = vector.broadcast %2 : f32 to vector<256x128xf32>
    %11 = arith.mulf %9, %10 : vector<256x128xf32>
    %12 = tpu.iota {dimensions = array<i32: 1>} : vector<256x128xi32>
    %c50_i32 = arith.constant 50 : i32
    %13 = vector.broadcast %c50_i32 : i32 to vector<256x128xi32>
    %14 = arith.cmpi slt, %12, %13 : vector<256x128xi32>
    %cst_7 = arith.constant -1.000000e+30 : f32
    %15 = vector.broadcast %cst_7 : f32 to vector<256x128xf32>
    %16 = arith.select %14, %11, %15 : vector<256x128xi1>, vector<256x128xf32>
    %cst_8 = arith.constant dense<0xFF800000> : vector<256xf32>
    %17 = vector.multi_reduction <maximumf>, %16, %cst_8 [1] : vector<256x128xf32> to vector<256xf32>
    %18 = vector.shape_cast %17 : vector<256xf32> to vector<256x1xf32>
    %19 = vector.broadcast %18 : vector<256x1xf32> to vector<256x128xf32>
    %20 = arith.subf %16, %19 : vector<256x128xf32>
    %21 = math.exp %20 : vector<256x128xf32>
    %cst_9 = arith.constant dense<0.000000e+00> : vector<256xf32>
    %22 = vector.multi_reduction <add>, %21, %cst_9 [1] : vector<256x128xf32> to vector<256xf32>
    %23 = vector.shape_cast %22 : vector<256xf32> to vector<256x1xf32>
    %24 = tpu.reciprocal %23 {approx = true} : vector<256x1xf32> -> vector<256x1xf32>
    %25 = arith.mulf %23, %24 : vector<256x1xf32>
    %cst_10 = arith.constant 2.000000e+00 : f32
    %26 = vector.broadcast %cst_10 : f32 to vector<256x1xf32>
    %27 = arith.subf %26, %25 : vector<256x1xf32>
    %28 = arith.mulf %24, %27 : vector<256x1xf32>
    %29 = vector.broadcast %28 : vector<256x1xf32> to vector<256x128xf32>
    %30 = arith.mulf %21, %29 : vector<256x128xf32>
    %c0_11 = arith.constant 0 : index
    %c0_12 = arith.constant 0 : index
    %31 = vector.load %arg6[%c0_11, %c0_12] : memref<256x128xf32, #tpu.memory_space<vmem>>, vector<256x128xf32>
    tpu.vector_store %arg6[%c0_11, %c0_12], %30 {strides = array<i32>} : memref<256x128xf32, #tpu.memory_space<vmem>>, vector<256x128xf32>,
    %32 = vector.broadcast %5 : vector<1x128xf32> to vector<256x128xf32>
    %33 = arith.mulf %21, %32 : vector<256x128xf32>
    %cst_13 = arith.constant dense<0.000000e+00> : vector<256xf32>
    %34 = vector.multi_reduction <add>, %33, %cst_13 [1] : vector<256x128xf32> to vector<256xf32>
    %35 = vector.shape_cast %34 : vector<256xf32> to vector<256x1xf32>
    %36 = arith.mulf %35, %28 : vector<256x1xf32>
    %c0_14 = arith.constant 0 : index
    %c0_15 = arith.constant 0 : index
    %37 = vector.load %arg5[%c0_14, %c0_15] : memref<256x1xf32, #tpu.memory_space<vmem>>, vector<256x1xf32>
    tpu.vector_store %arg5[%c0_14, %c0_15], %36 {strides = array<i32>} : memref<256x1xf32, #tpu.memory_space<vmem>>, vector<256x1xf32>,
    return
  }
  func.func @transform_0(%arg0: i32) -> (i32, i32) {
    %c0_i32 = arith.constant 0 : i32
    %c0_i32_0 = arith.constant 0 : i32
    %c0_i32_1 = arith.constant 0 : i32
    return %c0_i32, %c0_i32_0 : i32, i32
  }
  func.func @transform_1(%arg0: i32) -> (i32, i32) {
    %c0_i32 = arith.constant 0 : i32
    %c0_i32_0 = arith.constant 0 : i32
    return %arg0, %c0_i32 : i32, i32
  }
  func.func @transform_2(%arg0: i32) -> (i32, i32) {
    %c0_i32 = arith.constant 0 : i32
    %c0_i32_0 = arith.constant 0 : i32
    %c0_i32_1 = arith.constant 0 : i32
    return %c0_i32, %c0_i32_0 : i32, i32
  }
  func.func @transform_3(%arg0: i32) -> (i32, i32) {
    %c0_i32 = arith.constant 0 : i32
    %c0_i32_0 = arith.constant 0 : i32
    %c0_i32_1 = arith.constant 0 : i32
    return %c0_i32, %c0_i32_0 : i32, i32
  }
  func.func @transform_4(%arg0: i32) -> (i32, i32) {
    %c0_i32 = arith.constant 0 : i32
    %c0_i32_0 = arith.constant 0 : i32
    return %arg0, %c0_i32 : i32, i32
  }
  func.func @transform_5(%arg0: i32) -> (i32, i32) {
    %c0_i32 = arith.constant 0 : i32
    %c0_i32_0 = arith.constant 0 : i32
    return %arg0, %c0_i32 : i32, i32
  }
}

</mosaic_0001>

<bundles_post_ra>
// kernel: tpu_custom_call.1
= control target key start
LH: loop header
LB: loop body
LE: loop exit
PB: predicated region body
PF: predicated region fallthrough
CT: control target
= control target key end

     0   :  { %s3019_s0 = inlined_call_operand.<no memory space> [shape: f32[1,1], index: 0, kind: input, shape index: {}]   ;;  %s3020_s1 = inlined_call_operand.vmem [shape: f32[600,1], index: 1, kind: input, shape index: {}]   ;;  %s3021_s2 = inlined_call_operand.vmem [shape: f32[1,128], index: 2, kind: input, shape index: {}]   ;;  %s3022_s3 = inlined_call_operand.vmem [shape: f32[1,128], index: 3, kind: input, shape index: {}]   ;;  %s3023_s4 = inlined_call_operand.vmem [shape: f32[600,1], index: 4, kind: output, shape index: {0}]   ;;  %s3024_s5 = inlined_call_operand.hbm [shape: f32[600,128], index: 5, kind: output, shape index: {1}]  }
   0x1   :  { %3025 = sst [smem:[#allocation7_spill]] %s3020_s1 }
   0x2   :  { %3026 = sst [smem:[#allocation8_spill]] %s3021_s2 }
   0x3   :  { %11 = sst [smem:[#allocation2]] %s3019_s0 }
   0x4   :  { %12 = vsyncpa [#allocation5], 0 }
   0x5   :  { %14 = vsyncpa [#allocation5 + $0x1], 0  ;;  %s2016_s20 = smov 0   ;;  %s2018_s21 = smov 0  }
   0x6   :  { %s2020_s22 = smov 0   ;;  %s2022_s23 = smov 0  }
   0x7 LB: > { %s2037_s0 = sadd.s32 4294967295, %s1945_s23   ;;  %s1580_s24 = sadd.s32 4294967294, %s1945_s23   ;;  %s1945_s23 = sphi %s2022_s23, %s3039_s23   ;;  %s1941_s22 = sphi %s2020_s22, %s3038_s22   ;;  %s1937_s21 = sphi %s2018_s21, %s3037_s21   ;;  %s1933_s20 = sphi %s2016_s20, %s3036_s20  }
   0x8   : > { %s2041_s25 = sadd.s32 1, %s1945_s23   ;;  %s116_s26 = sadd.s32 1, %s1941_s22 }
   0x9   : > { %s113_s27 = ssub.s32 %s1945_s23, %s2041_s25  ;;  %p126_p0 = scmp.ne.s32.totalorder %s1941_s22, %s1937_s21 }
   0xa   : > { %p114_p1 = scmp.eq.s32.totalorder %s113_s27, 0  ;;  %p127_p2 = scmp.eq.s32.totalorder %s2037_s0, 2 }
   0xb   : > { %p158_p3 = scmp.ne.s32.totalorder %s1937_s21, %s1933_s20  ;;  %p159_p4 = scmp.eq.s32.totalorder %s1580_s24, 2 }
   0xc   : > { %s2052_s28 = scalar_select %p114_p1, %s1941_s22, %s116_s26  }
   0xd   : > { %p2054_p5 = por %p127_p2, %p126_p0  ;;  %p2058_p6 = por %p159_p4, %p158_p3 }
   0xe   : > { %p1583_p7 = scmp.ge.s32.totalorder %s1945_s23, 1  ;;  %p203_p8 = scmp.lt.s32.totalorder %s1945_s23, 4 }
  0x10   : > { %p204_p9 = pnand %p1583_p7, %p203_p8 }
  0x11   : > { %s2065_s6 = sshll.u32 (!%p204_p9), %s2037_s0, 5  ;;  %s3029_s1 = sld [smem:[#allocation7_spill]] (!%p204_p9) }
  0x12   : > { %207 = sbr.rel (%p204_p9) target bundleno = 665 (0x299), region = 36  ;;  %p244_p10 = scmp.lt.s32.totalorder (!%p204_p9), %s2065_s6, 74 }
  0x13   : > { %s263_s12 = sld [smem:[#allocation2]] (!%p204_p9)  ;;  %s229_s19 = sand.u32 (!%p204_p9), 1, %s1937_s21  }
  0x14   : > { %s3030_s2 = sld [smem:[#allocation8_spill]] (!%p204_p9)  ;;  %s2540_s24 = sshll.u32 (!%p204_p9), %s229_s19, 8 }
  0x15   : > { %s2547_s26 = scalar_lea.vmem (!%p204_p9), [#allocation4], %s2540_s24  ;;  %s2678_s27 = scalar_lea.vmem (!%p204_p9), [#allocation3], %s2540_s24  }
  0x17   : > { %v1979_v0 = vmov 0   ;;  %s245_s7 = scalar_select %p244_p10, %s2065_s6, 74  ;;  %v563_v33 = vlaneseq  ;;  %vm1148_vm1 = vcmask 7168  }
  0x18   : > { %1724 = vset.pattern.permute.xlu1 %v1979_v0  ;;  %1723 = vset.pattern.permute.xlu0 %v1979_v0  ;;  %s1614_s9 = sshll.u32 (%p2054_p5), %s2037_s0, 8 }
  0x19   : > { %s1587_s8 = sshll.u32 %s245_s7, 3  ;;  %s264_s13 = smul.f32 -0.5, %s263_s12  ;;  %v2111_v37 = vand.u32 127, %v563_v33 }
  0x1a   : > { %s2072_s11 = scalar_lea.vmem %s3029_s1, %s1587_s8  ;;  %v2109_v34 = vld [vmem:[%s3030_s2] ss:$0 sm:$0xff]  ;;  %s2830_s7 = scalar_lea.sflag [#allocation5], %s229_s19 }
  0x1b   : > { %v268_v1 = vld [vmem:[%s2072_s11 + $0x10] sm:$0xff]  ;;  %v266_v2 = vld [vmem:[%s2072_s11] sm:$0xff]  ;;  %v269_v3 = vld [vmem:[%s2072_s11 + $0x18] sm:$0xff]  ;;  %s265_s16 = smul.f32 %s264_s13, %s263_s12  ;;  %vm565_vm0 = vcmp.lt.s32.totalorder %v2111_v37, 50  ;;  %s1194_s8 = ssub.s32 (%p2054_p5), 75, %s2065_s6 }
  0x1c   : > { %312 = vperm.xlu1 %1724, %v268_v1   ;;  %302 = vperm.xlu0 %1723, %v266_v2   ;;  %v267_v4 = vld [vmem:[%s2072_s11 + $0x8] sm:$0xff]  ;;  %v270_v6 = vld [vmem:[%s2072_s11 + $0x20] sm:$0xff]  ;;  %v273_v7 = vld [vmem:[%s2072_s11 + $0x38] sm:$0xff]  ;;  %p1195_p11 = scmp.lt.s32.totalorder (%p2054_p5), %s1194_s8, 32  ;;  %s2839_s12 = scalar_lea.vmem (%p2054_p5), %s3023_s4, %s1614_s9  }
  0x1d   : > { %v271_v5 = vld [vmem:[%s2072_s11 + $0x28] sm:$0xff]  ;;  %v272_v8 = vld [vmem:[%s2072_s11 + $0x30] sm:$0xff]  ;;  %v274_v10 = vld [vmem:[%s2072_s11 + $0x40] sm:$0xff]  ;;  %v2115_v40 = vstv %s265_s16 }
  0x1e   : > { %v275_v9 = vld [vmem:[%s2072_s11 + $0x48] sm:$0xff]  ;;  %v277_v11 = vld [vmem:[%s2072_s11 + $0x58] sm:$0xff]  ;;  %v276_v12 = vld [vmem:[%s2072_s11 + $0x50] sm:$0xff] }
  0x1f   : > { %v279_v13 = vld [vmem:[%s2072_s11 + $0x68] sm:$0xff]  ;;  %v278_v14 = vld [vmem:[%s2072_s11 + $0x60] sm:$0xff]  ;;  %v281_v15 = vld [vmem:[%s2072_s11 + $0x78] sm:$0xff] }
  0x20   : > { %317 = vperm.xlu1 %1724, %v269_v3   ;;  %307 = vperm.xlu0 %1723, %v267_v4   ;;  %v280_v16 = vld [vmem:[%s2072_s11 + $0x70] sm:$0xff]  ;;  %v283_v17 = vld [vmem:[%s2072_s11 + $0x88] sm:$0xff]  ;;  %v282_v18 = vld [vmem:[%s2072_s11 + $0x80] sm:$0xff] }
  0x21   : > { %v285_v19 = vld [vmem:[%s2072_s11 + $0x98] sm:$0xff]  ;;  %v284_v20 = vld [vmem:[%s2072_s11 + $0x90] sm:$0xff]  ;;  %v287_v21 = vld [vmem:[%s2072_s11 + $0xa8] sm:$0xff] }
  0x22   : > { %v286_v22 = vld [vmem:[%s2072_s11 + $0xa0] sm:$0xff]  ;;  %v289_v23 = vld [vmem:[%s2072_s11 + $0xb8] sm:$0xff]  ;;  %v288_v24 = vld [vmem:[%s2072_s11 + $0xb0] sm:$0xff] }
  0x23   : > { %v291_v25 = vld [vmem:[%s2072_s11 + $0xc8] sm:$0xff]  ;;  %v290_v26 = vld [vmem:[%s2072_s11 + $0xc0] sm:$0xff]  ;;  %v293_v27 = vld [vmem:[%s2072_s11 + $0xd8] sm:$0xff] }
  0x24   : > { %327 = vperm.xlu1 %1724, %v271_v5   ;;  %322 = vperm.xlu0 %1723, %v270_v6   ;;  %v292_v28 = vld [vmem:[%s2072_s11 + $0xd0] sm:$0xff]  ;;  %v295_v29 = vld [vmem:[%s2072_s11 + $0xe8] sm:$0xff]  ;;  %v294_v30 = vld [vmem:[%s2072_s11 + $0xe0] sm:$0xff] }
  0x25   : > { %v297_v31 = vld [vmem:[%s2072_s11 + $0xf8] sm:$0xff]  ;;  %v296_v32 = vld [vmem:[%s2072_s11 + $0xf0] sm:$0xff] }
  0x28   : > { %337 = vperm.xlu1 %1724, %v273_v7   ;;  %332 = vperm.xlu0 %1723, %v272_v8  }
  0x2c   : > { %347 = vperm.xlu1 %1724, %v275_v9   ;;  %342 = vperm.xlu0 %1723, %v274_v10  }
  0x30   : > { %357 = vperm.xlu1 %1724, %v277_v11   ;;  %352 = vperm.xlu0 %1723, %v276_v12  }
  0x34   : > { %367 = vperm.xlu1 %1724, %v279_v13   ;;  %362 = vperm.xlu0 %1723, %v278_v14  }
  0x38   : > { %377 = vperm.xlu1 %1724, %v281_v15   ;;  %372 = vperm.xlu0 %1723, %v280_v16  }
  0x3c   : > { %387 = vperm.xlu1 %1724, %v283_v17   ;;  %382 = vperm.xlu0 %1723, %v282_v18  }
  0x40   : > { %397 = vperm.xlu1 %1724, %v285_v19   ;;  %392 = vperm.xlu0 %1723, %v284_v20  }
  0x44   : > { %407 = vperm.xlu1 %1724, %v287_v21   ;;  %402 = vperm.xlu0 %1723, %v286_v22  }
  0x48   : > { %417 = vperm.xlu1 %1724, %v289_v23   ;;  %412 = vperm.xlu0 %1723, %v288_v24  }
  0x4c   : > { %427 = vperm.xlu1 %1724, %v291_v25   ;;  %422 = vperm.xlu0 %1723, %v290_v26  }
  0x50   : > { %437 = vperm.xlu1 %1724, %v293_v27   ;;  %432 = vperm.xlu0 %1723, %v292_v28  }
  0x54   : > { %447 = vperm.xlu1 %1724, %v295_v29   ;;  %442 = vperm.xlu0 %1723, %v294_v30  }
  0x58   : > { %457 = vperm.xlu1 %1724, %v297_v31   ;;  %452 = vperm.xlu0 %1723, %v296_v32  }
  0x97   : > { %v313_v35 = vpop.permute.xlu1 %312  ;;  %v303_v36 = vpop.permute.xlu0 %302 }
  0x98   : > { %v468_v38 = vsub.f32 %v313_v35, %v2109_v34  ;;  %v466_v39 = vsub.f32 %v303_v36, %v2109_v34 }
  0x9a   : > { %v500_v41 = vmul.f32 %v468_v38, %v468_v38  ;;  %v498_v42 = vmul.f32 %v466_v39, %v466_v39 }
  0x9b   : > { %v318_v43 = vpop.permute.xlu1 %317  ;;  %v308_v44 = vpop.permute.xlu0 %307 }
  0x9c   : > { %v469_v45 = vsub.f32 %v318_v43, %v2109_v34  ;;  %v467_v46 = vsub.f32 %v308_v44, %v2109_v34  ;;  %v531_v47 = vmul.f32 %v2115_v40, %v498_v42  ;;  %v533_v48 = vmul.f32 %v2115_v40, %v500_v41 }
  0x9e   : > { %v501_v49 = vmul.f32 %v469_v45, %v469_v45  ;;  %v499_v50 = vmul.f32 %v467_v46, %v467_v46  ;;  %v2124_v51 = vsel %vm565_vm0, %v531_v47, -1e+30  ;;  %v2131_v56 = vsel %vm565_vm0, %v533_v48, -1e+30 }
  0x9f   : > { %v328_v52 = vpop.permute.xlu1 %327  ;;  %598 = vmax.xlane.f32.xlu0 %v2124_v51  ;;  %v323_v53 = vpop.permute.xlu0 %322 }
  0xa0   : > { %v471_v54 = vsub.f32 %v328_v52, %v2109_v34  ;;  %v470_v55 = vsub.f32 %v323_v53, %v2109_v34  ;;  %v532_v57 = vmul.f32 %v2115_v40, %v499_v50  ;;  %v534_v58 = vmul.f32 %v2115_v40, %v501_v49 }
  0xa2   : > { %v503_v59 = vmul.f32 %v471_v54, %v471_v54  ;;  %v502_v60 = vmul.f32 %v470_v55, %v470_v55  ;;  %v2137_v61 = vsel %vm565_vm0, %v532_v57, -1e+30  ;;  %v2146_v3 = vsel %vm565_vm0, %v534_v58, -1e+30 }
  0xa3   : > { %v338_v62 = vpop.permute.xlu1 %337  ;;  %602 = vmax.xlane.f32.xlu0 %v2131_v56  ;;  %600 = vmax.xlane.f32.xlu1 %v2137_v61  ;;  %v333_v63 = vpop.permute.xlu0 %332 }
  0xa4   : > { %v473_v0 = vsub.f32 %v338_v62, %v2109_v34  ;;  %v472_v1 = vsub.f32 %v333_v63, %v2109_v34  ;;  %v535_v2 = vmul.f32 %v2115_v40, %v502_v60  ;;  %v536_v7 = vmul.f32 %v2115_v40, %v503_v59 }
  0xa6   : > { %v505_v4 = vmul.f32 %v473_v0, %v473_v0  ;;  %v504_v5 = vmul.f32 %v472_v1, %v472_v1  ;;  %v2150_v6 = vsel %vm565_vm0, %v535_v2, -1e+30  ;;  %v2161_v16 = vsel %vm565_vm0, %v536_v7, -1e+30 }
  0xa7   : > { %v348_v8 = vpop.permute.xlu1 %347  ;;  %604 = vmax.xlane.f32.xlu0 %v2146_v3  ;;  %606 = vmax.xlane.f32.xlu1 %v2150_v6  ;;  %v343_v9 = vpop.permute.xlu0 %342 }
  0xa8   : > { %v475_v10 = vsub.f32 %v348_v8, %v2109_v34  ;;  %v474_v11 = vsub.f32 %v343_v9, %v2109_v34  ;;  %v537_v12 = vmul.f32 %v2115_v40, %v504_v5  ;;  %v538_v13 = vmul.f32 %v2115_v40, %v505_v4 }
  0xaa   : > { %v507_v14 = vmul.f32 %v475_v10, %v475_v10  ;;  %v506_v15 = vmul.f32 %v474_v11, %v474_v11  ;;  %v2165_v17 = vsel %vm565_vm0, %v537_v12, -1e+30  ;;  %v2174_v23 = vsel %vm565_vm0, %v538_v13, -1e+30 }
  0xab   : > { %v358_v18 = vpop.permute.xlu1 %357  ;;  %608 = vmax.xlane.f32.xlu0 %v2161_v16  ;;  %610 = vmax.xlane.f32.xlu1 %v2165_v17  ;;  %v353_v19 = vpop.permute.xlu0 %352 }
  0xac   : > { %v477_v20 = vsub.f32 %v358_v18, %v2109_v34  ;;  %v476_v21 = vsub.f32 %v353_v19, %v2109_v34  ;;  %v539_v22 = vmul.f32 %v2115_v40, %v506_v15  ;;  %v540_v27 = vmul.f32 %v2115_v40, %v507_v14 }
  0xae   : > { %v509_v24 = vmul.f32 %v477_v20, %v477_v20  ;;  %v508_v25 = vmul.f32 %v476_v21, %v476_v21  ;;  %v2178_v26 = vsel %vm565_vm0, %v539_v22, -1e+30  ;;  %v2189_v38 = vsel %vm565_vm0, %v540_v27, -1e+30 }
  0xaf   : > { %v368_v28 = vpop.permute.xlu1 %367  ;;  %612 = vmax.xlane.f32.xlu0 %v2174_v23  ;;  %614 = vmax.xlane.f32.xlu1 %v2178_v26  ;;  %v363_v29 = vpop.permute.xlu0 %362 }
  0xb0   : > { %v479_v30 = vsub.f32 %v368_v28, %v2109_v34  ;;  %v478_v31 = vsub.f32 %v363_v29, %v2109_v34  ;;  %v541_v32 = vmul.f32 %v2115_v40, %v508_v25  ;;  %v542_v33 = vmul.f32 %v2115_v40, %v509_v24 }
  0xb2   : > { %v511_v35 = vmul.f32 %v479_v30, %v479_v30  ;;  %v510_v36 = vmul.f32 %v478_v31, %v478_v31  ;;  %v2193_v39 = vsel %vm565_vm0, %v541_v32, -1e+30  ;;  %v2202_v46 = vsel %vm565_vm0, %v542_v33, -1e+30 }
  0xb3   : > { %v378_v41 = vpop.permute.xlu1 %377  ;;  %616 = vmax.xlane.f32.xlu0 %v2189_v38  ;;  %618 = vmax.xlane.f32.xlu1 %v2193_v39  ;;  %v373_v42 = vpop.permute.xlu0 %372 }
  0xb4   : > { %v481_v43 = vsub.f32 %v378_v41, %v2109_v34  ;;  %v480_v44 = vsub.f32 %v373_v42, %v2109_v34  ;;  %v543_v45 = vmul.f32 %v2115_v40, %v510_v36  ;;  %v544_v50 = vmul.f32 %v2115_v40, %v511_v35 }
  0xb6   : > { %v513_v47 = vmul.f32 %v481_v43, %v481_v43  ;;  %v512_v48 = vmul.f32 %v480_v44, %v480_v44  ;;  %v2206_v49 = vsel %vm565_vm0, %v543_v45, -1e+30  ;;  %v2217_v62 = vsel %vm565_vm0, %v544_v50, -1e+30 }
  0xb7   : > { %v388_v52 = vpop.permute.xlu1 %387  ;;  %620 = vmax.xlane.f32.xlu0 %v2202_v46  ;;  %622 = vmax.xlane.f32.xlu1 %v2206_v49  ;;  %v383_v53 = vpop.permute.xlu0 %382 }
  0xb8   : > { %v483_v54 = vsub.f32 %v388_v52, %v2109_v34  ;;  %v482_v55 = vsub.f32 %v383_v53, %v2109_v34  ;;  %v545_v57 = vmul.f32 %v2115_v40, %v512_v48  ;;  %v546_v58 = vmul.f32 %v2115_v40, %v513_v47 }
  0xba   : > { %v515_v59 = vmul.f32 %v483_v54, %v483_v54  ;;  %v514_v60 = vmul.f32 %v482_v55, %v482_v55  ;;  %v2221_v63 = vsel %vm565_vm0, %v545_v57, -1e+30  ;;  %v2230_v7 = vsel %vm565_vm0, %v546_v58, -1e+30 }
  0xbb   : > { %v398_v0 = vpop.permute.xlu1 %397  ;;  %624 = vmax.xlane.f32.xlu0 %v2217_v62  ;;  %626 = vmax.xlane.f32.xlu1 %v2221_v63  ;;  %v393_v1 = vpop.permute.xlu0 %392 }
  0xbc   : > { %v485_v2 = vsub.f32 %v398_v0, %v2109_v34  ;;  %v484_v4 = vsub.f32 %v393_v1, %v2109_v34  ;;  %v547_v5 = vmul.f32 %v2115_v40, %v514_v60  ;;  %v548_v11 = vmul.f32 %v2115_v40, %v515_v59 }
  0xbe   : > { %v517_v8 = vmul.f32 %v485_v2, %v485_v2  ;;  %v516_v9 = vmul.f32 %v484_v4, %v484_v4  ;;  %v2234_v10 = vsel %vm565_vm0, %v547_v5, -1e+30  ;;  %v2245_v22 = vsel %vm565_vm0, %v548_v11, -1e+30 }
  0xbf   : > { %v408_v12 = vpop.permute.xlu1 %407  ;;  %628 = vmax.xlane.f32.xlu0 %v2230_v7  ;;  %630 = vmax.xlane.f32.xlu1 %v2234_v10  ;;  %v403_v13 = vpop.permute.xlu0 %402 }
  0xc0   : > { %v487_v14 = vsub.f32 %v408_v12, %v2109_v34  ;;  %v486_v15 = vsub.f32 %v403_v13, %v2109_v34  ;;  %v549_v18 = vmul.f32 %v2115_v40, %v516_v9  ;;  %v550_v19 = vmul.f32 %v2115_v40, %v517_v8 }
  0xc2   : > { %v519_v20 = vmul.f32 %v487_v14, %v487_v14  ;;  %v518_v21 = vmul.f32 %v486_v15, %v486_v15  ;;  %v2249_v24 = vsel %vm565_vm0, %v549_v18, -1e+30  ;;  %v2258_v31 = vsel %vm565_vm0, %v550_v19, -1e+30 }
  0xc3   : > { %v418_v25 = vpop.permute.xlu1 %417  ;;  %632 = vmax.xlane.f32.xlu0 %v2245_v22  ;;  %634 = vmax.xlane.f32.xlu1 %v2249_v24  ;;  %v413_v27 = vpop.permute.xlu0 %412 }
  0xc4   : > { %v489_v28 = vsub.f32 %v418_v25, %v2109_v34  ;;  %v488_v29 = vsub.f32 %v413_v27, %v2109_v34  ;;  %v551_v30 = vmul.f32 %v2115_v40, %v518_v21  ;;  %v552_v36 = vmul.f32 %v2115_v40, %v519_v20 }
  0xc6   : > { %v521_v32 = vmul.f32 %v489_v28, %v489_v28  ;;  %v520_v33 = vmul.f32 %v488_v29, %v488_v29  ;;  %v2262_v35 = vsel %vm565_vm0, %v551_v30, -1e+30  ;;  %v2273_v52 = vsel %vm565_vm0, %v552_v36, -1e+30 }
  0xc7   : > { %v428_v41 = vpop.permute.xlu1 %427  ;;  %636 = vmax.xlane.f32.xlu0 %v2258_v31  ;;  %638 = vmax.xlane.f32.xlu1 %v2262_v35  ;;  %v423_v42 = vpop.permute.xlu0 %422 }
  0xc8   : > { %v491_v43 = vsub.f32 %v428_v41, %v2109_v34  ;;  %v490_v44 = vsub.f32 %v423_v42, %v2109_v34  ;;  %v553_v45 = vmul.f32 %v2115_v40, %v520_v33  ;;  %v554_v47 = vmul.f32 %v2115_v40, %v521_v32 }
  0xca   : > { %v523_v48 = vmul.f32 %v491_v43, %v491_v43  ;;  %v522_v50 = vmul.f32 %v490_v44, %v490_v44  ;;  %v2277_v53 = vsel %vm565_vm0, %v553_v45, -1e+30  ;;  %v2286_v60 = vsel %vm565_vm0, %v554_v47, -1e+30 }
  0xcb   : > { %v438_v54 = vpop.permute.xlu1 %437  ;;  %640 = vmax.xlane.f32.xlu0 %v2273_v52  ;;  %642 = vmax.xlane.f32.xlu1 %v2277_v53  ;;  %v433_v55 = vpop.permute.xlu0 %432 }
  0xcc   : > { %v493_v57 = vsub.f32 %v438_v54, %v2109_v34  ;;  %v492_v58 = vsub.f32 %v433_v55, %v2109_v34  ;;  %v555_v59 = vmul.f32 %v2115_v40, %v522_v50  ;;  %v556_v4 = vmul.f32 %v2115_v40, %v523_v48 }
  0xce   : > { %v525_v0 = vmul.f32 %v493_v57, %v493_v57  ;;  %v524_v1 = vmul.f32 %v492_v58, %v492_v58  ;;  %v2290_v2 = vsel %vm565_vm0, %v555_v59, -1e+30  ;;  %v2301_v18 = vsel %vm565_vm0, %v556_v4, -1e+30 }
  0xcf   : > { %v448_v5 = vpop.permute.xlu1 %447  ;;  %644 = vmax.xlane.f32.xlu0 %v2286_v60  ;;  %646 = vmax.xlane.f32.xlu1 %v2290_v2  ;;  %v443_v8 = vpop.permute.xlu0 %442 }
  0xd0   : > { %v495_v9 = vsub.f32 %v448_v5, %v2109_v34  ;;  %v494_v11 = vsub.f32 %v443_v8, %v2109_v34  ;;  %v557_v12 = vmul.f32 %v2115_v40, %v524_v1  ;;  %v558_v13 = vmul.f32 %v2115_v40, %v525_v0 }
  0xd2   : > { %v527_v14 = vmul.f32 %v495_v9, %v495_v9  ;;  %v526_v15 = vmul.f32 %v494_v11, %v494_v11  ;;  %v2305_v19 = vsel %vm565_vm0, %v557_v12, -1e+30  ;;  %v2314_v29 = vsel %vm565_vm0, %v558_v13, -1e+30 }
  0xd3   : > { %v458_v20 = vpop.permute.xlu1 %457  ;;  %648 = vmax.xlane.f32.xlu0 %v2301_v18  ;;  %650 = vmax.xlane.f32.xlu1 %v2305_v19  ;;  %v453_v21 = vpop.permute.xlu0 %452 }
  0xd4   : > { %v497_v25 = vsub.f32 %v458_v20, %v2109_v34  ;;  %v496_v27 = vsub.f32 %v453_v21, %v2109_v34  ;;  %v559_v28 = vmul.f32 %v2115_v40, %v526_v15  ;;  %v560_v36 = vmul.f32 %v2115_v40, %v527_v14 }
  0xd6   : > { %v529_v30 = vmul.f32 %v497_v25, %v497_v25  ;;  %v528_v32 = vmul.f32 %v496_v27, %v496_v27  ;;  %v2318_v33 = vsel %vm565_vm0, %v559_v28, -1e+30  ;;  %v2327_v42 = vsel %vm565_vm0, %v560_v36, -1e+30 }
  0xd7   : > { %652 = vmax.xlane.f32.xlu0 %v2314_v29  ;;  %654 = vmax.xlane.f32.xlu1 %v2318_v33 }
  0xd8   : > { %v561_v34 = vmul.f32 %v2115_v40, %v528_v32  ;;  %v562_v41 = vmul.f32 %v2115_v40, %v529_v30 }
  0xda   : > { %v2331_v43 = vsel %vm565_vm0, %v561_v34, -1e+30  ;;  %v2335_v44 = vsel %vm565_vm0, %v562_v41, -1e+30 }
  0xdb   : > { %656 = vmax.xlane.f32.xlu0 %v2327_v42  ;;  %658 = vmax.xlane.f32.xlu1 %v2331_v43 }
  0xdf   : > { %660 = vmax.xlane.f32.xlu0 %v2335_v44 }
 0x128   : > { %v599_v45 = vpop.xlane.xlu0 %598 }
 0x129   : > { %v662_v40 = vsub.f32 %v2124_v51, %v599_v45 }
 0x12b   : > { %v694_v47 = vmul.f32 1.442695, %v662_v40 }
 0x12c   : > { %v601_v48 = vpop.xlane.xlu1 %600  ;;  %v603_v50 = vpop.xlane.xlu0 %602 }
 0x12d   : > { %1725 = vpow2.f32 %v694_v47  ;;  %v663_v54 = vsub.f32 %v2137_v61, %v601_v48  ;;  %v664_v55 = vsub.f32 %v2131_v56, %v603_v50 }
 0x12f   : > { %v696_v37 = vmul.f32 1.442695, %v663_v54  ;;  %v698_v57 = vmul.f32 1.442695, %v664_v55 }
 0x130   : > { %v607_v58 = vpop.xlane.xlu1 %606  ;;  %v605_v59 = vpop.xlane.xlu0 %604 }
 0x131   : > { %1727 = vpow2.f32 %v696_v37  ;;  %v666_v0 = vsub.f32 %v2150_v6, %v607_v58  ;;  %v665_v1 = vsub.f32 %v2146_v3, %v605_v59 }
 0x132   : > { %1729 = vpow2.f32 %v698_v57 }
 0x133   : > { %v702_v4 = vmul.f32 1.442695, %v666_v0  ;;  %v700_v51 = vmul.f32 1.442695, %v665_v1 }
 0x134   : > { %v611_v5 = vpop.xlane.xlu1 %610  ;;  %v609_v8 = vpop.xlane.xlu0 %608 }
 0x135   : > { %1731 = vpow2.f32 %v702_v4  ;;  %v668_v9 = vsub.f32 %v2165_v17, %v611_v5  ;;  %v667_v61 = vsub.f32 %v2161_v16, %v609_v8 }
 0x136   : > { %1733 = vpow2.f32 %v700_v51 }
 0x137   : > { %v706_v56 = vmul.f32 1.442695, %v668_v9  ;;  %v704_v11 = vmul.f32 1.442695, %v667_v61 }
 0x138   : > { %v615_v12 = vpop.xlane.xlu1 %614  ;;  %v613_v13 = vpop.xlane.xlu0 %612 }
 0x139   : > { %1735 = vpow2.f32 %v706_v56  ;;  %v670_v6 = vsub.f32 %v2178_v26, %v615_v12  ;;  %v669_v3 = vsub.f32 %v2174_v23, %v613_v13 }
 0x13a   : > { %v2349_v14 = vpop.eup %1725  ;;  %1737 = vpow2.f32 %v704_v11 }
 0x13b   : > { %v710_v15 = vmul.f32 1.442695, %v670_v6  ;;  %v708_v20 = vmul.f32 1.442695, %v669_v3  ;;  %758 = vadd.xlane.f32.xlu1 %v2349_v14 }
 0x13c   : > { %v619_v17 = vpop.xlane.xlu1 %618  ;;  %v617_v21 = vpop.xlane.xlu0 %616 }
 0x13d   : > { %1739 = vpow2.f32 %v710_v15  ;;  %v672_v16 = vsub.f32 %v2193_v39, %v619_v17  ;;  %v671_v25 = vsub.f32 %v2189_v38, %v617_v21 }
 0x13e   : > { %v2354_v27 = vpop.eup %1727  ;;  %1741 = vpow2.f32 %v708_v20 }
 0x13f   : > { %v2356_v26 = vpop.eup %1729  ;;  %v714_v23 = vmul.f32 1.442695, %v672_v16  ;;  %v712_v28 = vmul.f32 1.442695, %v671_v25  ;;  %760 = vadd.xlane.f32.xlu0 %v2354_v27 }
 0x140   : > { %762 = vadd.xlane.f32.xlu1 %v2356_v26  ;;  %v623_v30 = vpop.xlane.xlu1 %622  ;;  %v621_v32 = vpop.xlane.xlu0 %620 }
 0x141   : > { %1743 = vpow2.f32 %v714_v23  ;;  %v674_v36 = vsub.f32 %v2206_v49, %v623_v30  ;;  %v673_v39 = vsub.f32 %v2202_v46, %v621_v32 }
 0x142   : > { %v2362_v34 = vpop.eup %1731  ;;  %1745 = vpow2.f32 %v712_v28 }
 0x143   : > { %v2364_v38 = vpop.eup %1733  ;;  %v718_v41 = vmul.f32 1.442695, %v674_v36  ;;  %v716_v45 = vmul.f32 1.442695, %v673_v39 }
 0x144   : > { %766 = vadd.xlane.f32.xlu1 %v2362_v34  ;;  %764 = vadd.xlane.f32.xlu0 %v2364_v38  ;;  %v627_v40 = vpop.xlane.xlu1 %626  ;;  %v625_v47 = vpop.xlane.xlu0 %624 }
 0x145   : > { %1747 = vpow2.f32 %v718_v41  ;;  %v676_v48 = vsub.f32 %v2221_v63, %v627_v40  ;;  %v675_v49 = vsub.f32 %v2217_v62, %v625_v47 }
 0x146   : > { %v2370_v50 = vpop.eup %1735  ;;  %1749 = vpow2.f32 %v716_v45 }
 0x147   : > { %v2372_v46 = vpop.eup %1737  ;;  %v722_v54 = vmul.f32 1.442695, %v676_v48  ;;  %v720_v55 = vmul.f32 1.442695, %v675_v49 }
 0x148   : > { %770 = vadd.xlane.f32.xlu1 %v2370_v50  ;;  %768 = vadd.xlane.f32.xlu0 %v2372_v46  ;;  %v631_v37 = vpop.xlane.xlu1 %630  ;;  %v629_v57 = vpop.xlane.xlu0 %628 }
 0x149   : > { %1751 = vpow2.f32 %v722_v54  ;;  %v678_v58 = vsub.f32 %v2234_v10, %v631_v37  ;;  %v677_v63 = vsub.f32 %v2230_v7, %v629_v57 }
 0x14a   : > { %v2378_v59 = vpop.eup %1739  ;;  %1753 = vpow2.f32 %v720_v55 }
 0x14b   : > { %v2380_v62 = vpop.eup %1741  ;;  %v726_v0 = vmul.f32 1.442695, %v678_v58  ;;  %v724_v1 = vmul.f32 1.442695, %v677_v63 }
 0x14c   : > { %774 = vadd.xlane.f32.xlu1 %v2378_v59  ;;  %772 = vadd.xlane.f32.xlu0 %v2380_v62  ;;  %v635_v4 = vpop.xlane.xlu1 %634  ;;  %v633_v51 = vpop.xlane.xlu0 %632 }
 0x14d   : > { %1755 = vpow2.f32 %v726_v0  ;;  %v680_v5 = vsub.f32 %v2249_v24, %v635_v4  ;;  %v679_v10 = vsub.f32 %v2245_v22, %v633_v51 }
 0x14e   : > { %v2386_v8 = vpop.eup %1743  ;;  %1757 = vpow2.f32 %v724_v1 }
 0x14f   : > { %v2388_v7 = vpop.eup %1745  ;;  %v730_v9 = vmul.f32 1.442695, %v680_v5  ;;  %v728_v61 = vmul.f32 1.442695, %v679_v10 }
 0x150   : > { %778 = vadd.xlane.f32.xlu1 %v2386_v8  ;;  %776 = vadd.xlane.f32.xlu0 %v2388_v7  ;;  %v639_v56 = vpop.xlane.xlu1 %638  ;;  %v637_v11 = vpop.xlane.xlu0 %636 }
 0x151   : > { %1759 = vpow2.f32 %v730_v9  ;;  %v682_v12 = vsub.f32 %v2262_v35, %v639_v56  ;;  %v681_v24 = vsub.f32 %v2258_v31, %v637_v11 }
 0x152   : > { %v2394_v13 = vpop.eup %1747  ;;  %1761 = vpow2.f32 %v728_v61 }
 0x153   : > { %v2396_v22 = vpop.eup %1749  ;;  %v734_v6 = vmul.f32 1.442695, %v682_v12  ;;  %v732_v3 = vmul.f32 1.442695, %v681_v24 }
 0x154   : > { %782 = vadd.xlane.f32.xlu1 %v2394_v13  ;;  %780 = vadd.xlane.f32.xlu0 %v2396_v22  ;;  %v643_v15 = vpop.xlane.xlu1 %642  ;;  %v641_v20 = vpop.xlane.xlu0 %640 }
 0x155   : > { %1763 = vpow2.f32 %v734_v6  ;;  %v684_v17 = vsub.f32 %v2277_v53, %v643_v15  ;;  %v683_v35 = vsub.f32 %v2273_v52, %v641_v20  ;;  %v2466_v15 = vld [vmem:[%s3022_s3] ss:$0 sm:$0xff] }
 0x156   : > { %v2402_v21 = vpop.eup %1751  ;;  %1765 = vpow2.f32 %v732_v3 }
 0x157   : > { %v2404_v31 = vpop.eup %1753  ;;  %v738_v16 = vmul.f32 1.442695, %v684_v17  ;;  %v736_v25 = vmul.f32 1.442695, %v683_v35  ;;  %v1020_v17 = vmul.f32 %v2349_v14, %v2466_v15  ;;  %v1022_v35 = vmul.f32 %v2356_v26, %v2466_v15 }
 0x158   : > { %786 = vadd.xlane.f32.xlu1 %v2402_v21  ;;  %784 = vadd.xlane.f32.xlu0 %v2404_v31  ;;  %v647_v23 = vpop.xlane.xlu1 %646  ;;  %v645_v28 = vpop.xlane.xlu0 %644 }
 0x159   : > { %1767 = vpow2.f32 %v738_v16  ;;  %v686_v30 = vsub.f32 %v2290_v2, %v647_v23  ;;  %v685_v53 = vsub.f32 %v2286_v60, %v645_v28  ;;  %v1021_v16 = vmul.f32 %v2354_v27, %v2466_v15 }
 0x15a   : > { %v2410_v32 = vpop.eup %1755  ;;  %1769 = vpow2.f32 %v736_v25  ;;  %v1024_v25 = vmul.f32 %v2362_v34, %v2466_v15  ;;  %v1023_v23 = vmul.f32 %v2364_v38, %v2466_v15  ;;  %v1026_v28 = vmul.f32 %v2370_v50, %v2466_v15 }
 0x15b   : > { %v2412_v52 = vpop.eup %1757  ;;  %v742_v36 = vmul.f32 1.442695, %v686_v30  ;;  %v740_v39 = vmul.f32 1.442695, %v685_v53  ;;  %v1025_v30 = vmul.f32 %v2372_v46, %v2466_v15  ;;  %v1028_v53 = vmul.f32 %v2378_v59, %v2466_v15 }
 0x15c   : > { %790 = vadd.xlane.f32.xlu1 %v2410_v32  ;;  %788 = vadd.xlane.f32.xlu0 %v2412_v52  ;;  %v651_v41 = vpop.xlane.xlu1 %650  ;;  %v649_v45 = vpop.xlane.xlu0 %648 }
 0x15d   : > { %1771 = vpow2.f32 %v742_v36  ;;  %v688_v40 = vsub.f32 %v2305_v19, %v651_v41  ;;  %v687_v2 = vsub.f32 %v2301_v18, %v649_v45  ;;  %v1027_v36 = vmul.f32 %v2380_v62, %v2466_v15 }
 0x15e   : > { %v2418_v47 = vpop.eup %1759  ;;  %1773 = vpow2.f32 %v740_v39  ;;  %v1030_v39 = vmul.f32 %v2386_v8, %v2466_v15  ;;  %v1029_v41 = vmul.f32 %v2388_v7, %v2466_v15  ;;  %v1032_v45 = vmul.f32 %v2394_v13, %v2466_v15 }
 0x15f   : > { %v2420_v60 = vpop.eup %1761  ;;  %v746_v48 = vmul.f32 1.442695, %v688_v40  ;;  %v744_v49 = vmul.f32 1.442695, %v687_v2  ;;  %v1031_v40 = vmul.f32 %v2396_v22, %v2466_v15  ;;  %v1034_v2 = vmul.f32 %v2402_v21, %v2466_v15 }
 0x160   : > { %794 = vadd.xlane.f32.xlu1 %v2418_v47  ;;  %792 = vadd.xlane.f32.xlu0 %v2420_v60  ;;  %v655_v54 = vpop.xlane.xlu1 %654  ;;  %v653_v55 = vpop.xlane.xlu0 %652 }
 0x161   : > { %1775 = vpow2.f32 %v746_v48  ;;  %v690_v37 = vsub.f32 %v2318_v33, %v655_v54  ;;  %v689_v19 = vsub.f32 %v2314_v29, %v653_v55  ;;  %v1033_v48 = vmul.f32 %v2404_v31, %v2466_v15 }
 0x162   : > { %v2426_v57 = vpop.eup %1763  ;;  %1777 = vpow2.f32 %v744_v49  ;;  %v1036_v49 = vmul.f32 %v2410_v32, %v2466_v15  ;;  %v1035_v54 = vmul.f32 %v2412_v52, %v2466_v15  ;;  %v1038_v55 = vmul.f32 %v2418_v47, %v2466_v15 }
 0x163   : > { %v2428_v18 = vpop.eup %1765  ;;  %v750_v58 = vmul.f32 1.442695, %v690_v37  ;;  %v748_v63 = vmul.f32 1.442695, %v689_v19  ;;  %v1037_v37 = vmul.f32 %v2420_v60, %v2466_v15  ;;  %v1040_v19 = vmul.f32 %v2426_v57, %v2466_v15 }
 0x164   : > { %798 = vadd.xlane.f32.xlu1 %v2426_v57  ;;  %796 = vadd.xlane.f32.xlu0 %v2428_v18  ;;  %v659_v0 = vpop.xlane.xlu1 %658  ;;  %v657_v1 = vpop.xlane.xlu0 %656 }
 0x165   : > { %1779 = vpow2.f32 %v750_v58  ;;  %v692_v4 = vsub.f32 %v2331_v43, %v659_v0  ;;  %v691_v33 = vsub.f32 %v2327_v42, %v657_v1  ;;  %v1039_v58 = vmul.f32 %v2428_v18, %v2466_v15 }
 0x166   : > { %v2434_v51 = vpop.eup %1767  ;;  %1781 = vpow2.f32 %v748_v63 }
 0x167   : > { %v2436_v29 = vpop.eup %1769  ;;  %v754_v5 = vmul.f32 1.442695, %v692_v4  ;;  %v752_v10 = vmul.f32 1.442695, %v691_v33  ;;  %v1042_v63 = vmul.f32 %v2434_v51, %v2466_v15 }
 0x168   : > { %802 = vadd.xlane.f32.xlu1 %v2434_v51  ;;  %800 = vadd.xlane.f32.xlu0 %v2436_v29  ;;  %v661_v9 = vpop.xlane.xlu0 %660  ;;  %v1041_v0 = vmul.f32 %v2436_v29, %v2466_v15 }
 0x169   : > { %1783 = vpow2.f32 %v754_v5  ;;  %v693_v61 = vsub.f32 %v2335_v44, %v661_v9 }
 0x16a   : > { %v2441_v56 = vpop.eup %1771  ;;  %1785 = vpow2.f32 %v752_v10 }
 0x16b   : > { %v2443_v43 = vpop.eup %1773  ;;  %v756_v42 = vmul.f32 1.442695, %v693_v61  ;;  %v1044_v1 = vmul.f32 %v2441_v56, %v2466_v15 }
 0x16c   : > { %806 = vadd.xlane.f32.xlu1 %v2441_v56  ;;  %804 = vadd.xlane.f32.xlu0 %v2443_v43  ;;  %v1043_v4 = vmul.f32 %v2443_v43, %v2466_v15 }
 0x16d   : > { %1787 = vpow2.f32 %v756_v42 }
 0x16e   : > { %v2447_v11 = vpop.eup %1775 }
 0x16f   : > { %v2449_v12 = vpop.eup %1777  ;;  %v1046_v33 = vmul.f32 %v2447_v11, %v2466_v15 }
 0x170   : > { %810 = vadd.xlane.f32.xlu1 %v2447_v11  ;;  %808 = vadd.xlane.f32.xlu0 %v2449_v12  ;;  %v1045_v5 = vmul.f32 %v2449_v12, %v2466_v15 }
 0x172   : > { %v2453_v44 = vpop.eup %1779 }
 0x173   : > { %v2455_v24 = vpop.eup %1781  ;;  %v1048_v10 = vmul.f32 %v2453_v44, %v2466_v15 }
 0x174   : > { %814 = vadd.xlane.f32.xlu1 %v2453_v44  ;;  %812 = vadd.xlane.f32.xlu0 %v2455_v24  ;;  %v1047_v9 = vmul.f32 %v2455_v24, %v2466_v15 }
 0x176   : > { %v2459_v6 = vpop.eup %1783 }
 0x177   : > { %v2461_v3 = vpop.eup %1785  ;;  %v1050_v61 = vmul.f32 %v2459_v6, %v2466_v15 }
 0x178   : > { %818 = vadd.xlane.f32.xlu1 %v2459_v6  ;;  %816 = vadd.xlane.f32.xlu0 %v2461_v3  ;;  %v1049_v42 = vmul.f32 %v2461_v3, %v2466_v15 }
 0x17a   : > { %v2470_v20 = vpop.eup %1787 }
 0x17c   : > { %1052 = vadd.xlane.f32.xlu1 %v1020_v17  ;;  %820 = vadd.xlane.f32.xlu0 %v2470_v20  ;;  %v1051_v17 = vmul.f32 %v2470_v20, %v2466_v15 }
 0x180   : > { %1056 = vadd.xlane.f32.xlu1 %v1022_v35  ;;  %1054 = vadd.xlane.f32.xlu0 %v1021_v16 }
 0x184   : > { %1060 = vadd.xlane.f32.xlu1 %v1024_v25  ;;  %1058 = vadd.xlane.f32.xlu0 %v1023_v23 }
 0x188   : > { %1064 = vadd.xlane.f32.xlu1 %v1026_v28  ;;  %1062 = vadd.xlane.f32.xlu0 %v1025_v30 }
 0x18c   : > { %1068 = vadd.xlane.f32.xlu1 %v1028_v53  ;;  %1066 = vadd.xlane.f32.xlu0 %v1027_v36 }
 0x190   : > { %1072 = vadd.xlane.f32.xlu1 %v1030_v39  ;;  %1070 = vadd.xlane.f32.xlu0 %v1029_v41 }
 0x194   : > { %1076 = vadd.xlane.f32.xlu1 %v1032_v45  ;;  %1074 = vadd.xlane.f32.xlu0 %v1031_v40 }
 0x198   : > { %1080 = vadd.xlane.f32.xlu1 %v1034_v2  ;;  %1078 = vadd.xlane.f32.xlu0 %v1033_v48 }
 0x19c   : > { %1084 = vadd.xlane.f32.xlu1 %v1036_v49  ;;  %1082 = vadd.xlane.f32.xlu0 %v1035_v54 }
 0x1a0   : > { %1088 = vadd.xlane.f32.xlu1 %v1038_v55  ;;  %1086 = vadd.xlane.f32.xlu0 %v1037_v37 }
 0x1a4   : > { %1092 = vadd.xlane.f32.xlu1 %v1040_v19  ;;  %1090 = vadd.xlane.f32.xlu0 %v1039_v58 }
 0x1a8   : > { %1096 = vadd.xlane.f32.xlu1 %v1042_v63  ;;  %1094 = vadd.xlane.f32.xlu0 %v1041_v0 }
 0x1ac   : > { %1100 = vadd.xlane.f32.xlu1 %v1044_v1  ;;  %1098 = vadd.xlane.f32.xlu0 %v1043_v4 }
 0x1b0   : > { %1104 = vadd.xlane.f32.xlu1 %v1046_v33  ;;  %1102 = vadd.xlane.f32.xlu0 %v1045_v5 }
 0x1b4   : > { %1108 = vadd.xlane.f32.xlu1 %v1048_v10  ;;  %1106 = vadd.xlane.f32.xlu0 %v1047_v9 }
 0x1b8   : > { %1112 = vadd.xlane.f32.xlu1 %v1050_v61  ;;  %1110 = vadd.xlane.f32.xlu0 %v1049_v42 }
 0x1bc   : > { %1114 = vadd.xlane.f32.xlu0 %v1051_v17 }
 0x1c4   : > { %v759_v35 = vpop.xlane.xlu1 %758 }
 0x1c5   : > { %1789 = vrcp.f32 %v759_v35 }
 0x1c8   : > { %v761_v16 = vpop.xlane.xlu0 %760 }
 0x1c9   : > { %v763_v25 = vpop.xlane.xlu1 %762  ;;  %1791 = vrcp.f32 %v761_v16 }
 0x1ca   : > { %1793 = vrcp.f32 %v763_v25 }
 0x1cd   : > { %v767_v23 = vpop.xlane.xlu1 %766  ;;  %v765_v28 = vpop.xlane.xlu0 %764 }
 0x1ce   : > { %1795 = vrcp.f32 %v767_v23 }
 0x1cf   : > { %1797 = vrcp.f32 %v765_v28 }
 0x1d1   : > { %v771_v30 = vpop.xlane.xlu1 %770  ;;  %v769_v53 = vpop.xlane.xlu0 %768 }
 0x1d2   : > { %v1790_v36 = vpop.eup %1789  ;;  %1799 = vrcp.f32 %v771_v30 }
 0x1d3   : > { %v854_v39 = vmul.f32 %v1790_v36, %v759_v35  ;;  %1801 = vrcp.f32 %v769_v53 }
 0x1d5   : > { %v886_v41 = vsub.f32 2.0, %v854_v39  ;;  %v775_v15 = vpop.xlane.xlu1 %774  ;;  %v773_v45 = vpop.xlane.xlu0 %772 }
 0x1d6   : > { %v1792_v40 = vpop.eup %1791  ;;  %1803 = vrcp.f32 %v775_v15 }
 0x1d7   : > { %v1794_v2 = vpop.eup %1793  ;;  %v855_v48 = vmul.f32 %v1792_v40, %v761_v16  ;;  %1805 = vrcp.f32 %v773_v45  ;;  %v2542_v49 = vmul.f32 %v1790_v36, %v886_v41 }
 0x1d8   : > { %v856_v54 = vmul.f32 %v1794_v2, %v763_v25 }
 0x1d9   : > { %v887_v55 = vsub.f32 2.0, %v855_v48  ;;  %v779_v37 = vpop.xlane.xlu1 %778  ;;  %v777_v19 = vpop.xlane.xlu0 %776  ;;  %v950_v58 = vmul.f32 %v2349_v14, %v2542_v49 }
 0x1da   : > { %v888_v63 = vsub.f32 2.0, %v856_v54  ;;  %1807 = vrcp.f32 %v779_v37 }
 0x1db   : > { %v1796_v0 = vpop.eup %1795  ;;  %1809 = vrcp.f32 %v777_v19  ;;  %982 = vst [vmem:[%s2547_s26] sm:$0xff] %v950_v58  ;;  %v2550_v1 = vmul.f32 %v1792_v40, %v887_v55 }
 0x1dc   : > { %v1798_v4 = vpop.eup %1797  ;;  %v858_v33 = vmul.f32 %v1796_v0, %v767_v23  ;;  %v2552_v5 = vmul.f32 %v1794_v2, %v888_v63 }
 0x1dd   : > { %v857_v10 = vmul.f32 %v1798_v4, %v765_v28  ;;  %v783_v9 = vpop.xlane.xlu1 %782  ;;  %v781_v61 = vpop.xlane.xlu0 %780  ;;  %v951_v14 = vmul.f32 %v2354_v27, %v2550_v1 }
 0x1de   : > { %v890_v42 = vsub.f32 2.0, %v858_v33  ;;  %1811 = vrcp.f32 %v783_v9  ;;  %v952_v17 = vmul.f32 %v2356_v26, %v2552_v5 }
 0x1df   : > { %v1800_v35 = vpop.eup %1799  ;;  %v889_v16 = vsub.f32 2.0, %v857_v10  ;;  %1813 = vrcp.f32 %v781_v61  ;;  %983 = vst [vmem:[%s2547_s26 + $0x8] sm:$0xff] %v951_v14 }
 0x1e0   : > { %v1802_v25 = vpop.eup %1801  ;;  %v860_v36 = vmul.f32 %v1800_v35, %v771_v30  ;;  %984 = vst [vmem:[%s2547_s26 + $0x10] sm:$0xff] %v952_v17  ;;  %v2560_v23 = vmul.f32 %v1796_v0, %v890_v42 }
 0x1e1   : > { %v859_v28 = vmul.f32 %v1802_v25, %v769_v53  ;;  %v787_v39 = vpop.xlane.xlu1 %786  ;;  %v785_v41 = vpop.xlane.xlu0 %784  ;;  %v2562_v27 = vmul.f32 %v1798_v4, %v889_v16 }
 0x1e2   : > { %v892_v40 = vsub.f32 2.0, %v860_v36  ;;  %1815 = vrcp.f32 %v787_v39  ;;  %v954_v26 = vmul.f32 %v2362_v34, %v2560_v23 }
 0x1e3   : > { %v1804_v2 = vpop.eup %1803  ;;  %v891_v48 = vsub.f32 2.0, %v859_v28  ;;  %1817 = vrcp.f32 %v785_v41  ;;  %v953_v30 = vmul.f32 %v2364_v38, %v2562_v27 }
 0x1e4   : > { %v1806_v54 = vpop.eup %1805  ;;  %v862_v55 = vmul.f32 %v1804_v2, %v775_v15  ;;  %986 = vst [vmem:[%s2547_s26 + $0x20] sm:$0xff] %v954_v26  ;;  %v2569_v53 = vmul.f32 %v1800_v35, %v892_v40 }
 0x1e5   : > { %v861_v58 = vmul.f32 %v1806_v54, %v773_v45  ;;  %v791_v63 = vpop.xlane.xlu1 %790  ;;  %v789_v0 = vpop.xlane.xlu0 %788  ;;  %985 = vst [vmem:[%s2547_s26 + $0x18] sm:$0xff] %v953_v30  ;;  %v2572_v4 = vmul.f32 %v1802_v25, %v891_v48 }
 0x1e6   : > { %v894_v34 = vsub.f32 2.0, %v862_v55  ;;  %1819 = vrcp.f32 %v791_v63  ;;  %v956_v33 = vmul.f32 %v2370_v50, %v2569_v53 }
 0x1e7   : > { %v1808_v10 = vpop.eup %1807  ;;  %v893_v38 = vsub.f32 2.0, %v861_v58  ;;  %1821 = vrcp.f32 %v789_v0  ;;  %v955_v15 = vmul.f32 %v2372_v46, %v2572_v4 }
 0x1e8   : > { %v1810_v14 = vpop.eup %1809  ;;  %v864_v42 = vmul.f32 %v1808_v10, %v779_v37  ;;  %988 = vst [vmem:[%s2547_s26 + $0x30] sm:$0xff] %v956_v33  ;;  %v2579_v45 = vmul.f32 %v1804_v2, %v894_v34 }
 0x1e9   : > { %v863_v17 = vmul.f32 %v1810_v14, %v777_v19  ;;  %v795_v35 = vpop.xlane.xlu1 %794  ;;  %v793_v16 = vpop.xlane.xlu0 %792  ;;  %987 = vst [vmem:[%s2547_s26 + $0x28] sm:$0xff] %v955_v15  ;;  %v2582_v25 = vmul.f32 %v1806_v54, %v893_v38 }
 0x1ea   : > { %v896_v50 = vsub.f32 2.0, %v864_v42  ;;  %1823 = vrcp.f32 %v795_v35  ;;  %v958_v36 = vmul.f32 %v2378_v59, %v2579_v45 }
 0x1eb   : > { %v1812_v28 = vpop.eup %1811  ;;  %v895_v46 = vsub.f32 2.0, %v863_v17  ;;  %1825 = vrcp.f32 %v793_v16  ;;  %v957_v37 = vmul.f32 %v2380_v62, %v2582_v25 }
 0x1ec   : > { %v1814_v40 = vpop.eup %1813  ;;  %v866_v26 = vmul.f32 %v1812_v28, %v783_v9  ;;  %990 = vst [vmem:[%s2547_s26 + $0x40] sm:$0xff] %v958_v36  ;;  %v2589_v19 = vmul.f32 %v1808_v10, %v896_v50 }
 0x1ed   : > { %v865_v2 = vmul.f32 %v1814_v40, %v781_v61  ;;  %v799_v48 = vpop.xlane.xlu1 %798  ;;  %v797_v30 = vpop.xlane.xlu0 %796  ;;  %989 = vst [vmem:[%s2547_s26 + $0x38] sm:$0xff] %v957_v37  ;;  %v2592_v54 = vmul.f32 %v1810_v14, %v895_v46 }
 0x1ee   : > { %v898_v59 = vsub.f32 2.0, %v866_v26  ;;  %1827 = vrcp.f32 %v799_v48  ;;  %v960_v55 = vmul.f32 %v2386_v8, %v2589_v19 }
 0x1ef   : > { %v1816_v58 = vpop.eup %1815  ;;  %v897_v62 = vsub.f32 2.0, %v865_v2  ;;  %1829 = vrcp.f32 %v797_v30  ;;  %v959_v9 = vmul.f32 %v2388_v7, %v2592_v54 }
 0x1f0   : > { %v1818_v34 = vpop.eup %1817  ;;  %v868_v33 = vmul.f32 %v1816_v58, %v787_v39  ;;  %992 = vst [vmem:[%s2547_s26 + $0x50] sm:$0xff] %v960_v55  ;;  %v2599_v61 = vmul.f32 %v1812_v28, %v898_v59 }
 0x1f1   : > { %v867_v10 = vmul.f32 %v1818_v34, %v785_v41  ;;  %v803_v38 = vpop.xlane.xlu1 %802  ;;  %v801_v15 = vpop.xlane.xlu0 %800  ;;  %991 = vst [vmem:[%s2547_s26 + $0x48] sm:$0xff] %v959_v9  ;;  %v2602_v14 = vmul.f32 %v1814_v40, %v897_v62 }
 0x1f2   : > { %v900_v8 = vsub.f32 2.0, %v868_v33  ;;  %1831 = vrcp.f32 %v803_v38  ;;  %v962_v42 = vmul.f32 %v2394_v13, %v2599_v61 }
 0x1f3   : > { %v1820_v17 = vpop.eup %1819  ;;  %v899_v7 = vsub.f32 2.0, %v867_v10  ;;  %1833 = vrcp.f32 %v801_v15  ;;  %v961_v39 = vmul.f32 %v2396_v22, %v2602_v14 }
 0x1f4   : > { %v1822_v50 = vpop.eup %1821  ;;  %v870_v36 = vmul.f32 %v1820_v17, %v791_v63  ;;  %994 = vst [vmem:[%s2547_s26 + $0x60] sm:$0xff] %v962_v42  ;;  %v2609_v41 = vmul.f32 %v1816_v58, %v900_v8 }
 0x1f5   : > { %v869_v28 = vmul.f32 %v1822_v50, %v789_v0  ;;  %v807_v46 = vpop.xlane.xlu1 %806  ;;  %v805_v37 = vpop.xlane.xlu0 %804  ;;  %993 = vst [vmem:[%s2547_s26 + $0x58] sm:$0xff] %v961_v39  ;;  %v2612_v40 = vmul.f32 %v1818_v34, %v899_v7 }
 0x1f6   : > { %v902_v13 = vsub.f32 2.0, %v870_v36  ;;  %1835 = vrcp.f32 %v807_v46  ;;  %v964_v26 = vmul.f32 %v2402_v21, %v2609_v41 }
 0x1f7   : > { %v1824_v2 = vpop.eup %1823  ;;  %v901_v22 = vsub.f32 2.0, %v869_v28  ;;  %1837 = vrcp.f32 %v805_v37  ;;  %v963_v63 = vmul.f32 %v2404_v31, %v2612_v40 }
 0x1f8   : > { %v1826_v59 = vpop.eup %1825  ;;  %v872_v55 = vmul.f32 %v1824_v2, %v795_v35  ;;  %996 = vst [vmem:[%s2547_s26 + $0x70] sm:$0xff] %v964_v26  ;;  %v2619_v0 = vmul.f32 %v1820_v17, %v902_v13 }
 0x1f9   : > { %v871_v58 = vmul.f32 %v1826_v59, %v793_v16  ;;  %v811_v62 = vpop.xlane.xlu1 %810  ;;  %v2621_v9 = vpop.xlane.xlu0 %808  ;;  %995 = vst [vmem:[%s2547_s26 + $0x68] sm:$0xff] %v963_v63  ;;  %v2624_v34 = vmul.f32 %v1822_v50, %v901_v22 }
 0x1fa   : > { %v904_v21 = vsub.f32 2.0, %v872_v55  ;;  %1839 = vrcp.f32 %v811_v62  ;;  %v966_v33 = vmul.f32 %v2410_v32, %v2619_v0 }
 0x1fb   : > { %v1828_v31 = vpop.eup %1827  ;;  %v903_v10 = vsub.f32 2.0, %v871_v58  ;;  %1841 = vrcp.f32 %v2621_v9  ;;  %v965_v35 = vmul.f32 %v2412_v52, %v2624_v34 }
 0x1fc   : > { %v1830_v16 = vpop.eup %1829  ;;  %v874_v8 = vmul.f32 %v1828_v31, %v799_v48  ;;  %998 = vst [vmem:[%s2547_s26 + $0x80] sm:$0xff] %v966_v33  ;;  %v2632_v42 = vmul.f32 %v1824_v2, %v904_v21 }
 0x1fd   : > { %v873_v17 = vmul.f32 %v1830_v16, %v797_v30  ;;  %v2634_v7 = vpop.xlane.xlu1 %814  ;;  %v2636_v39 = vpop.xlane.xlu0 %812  ;;  %997 = vst [vmem:[%s2547_s26 + $0x78] sm:$0xff] %v965_v35  ;;  %v2639_v32 = vmul.f32 %v1826_v59, %v903_v10 }
 0x1fe   : > { %v906_v50 = vsub.f32 2.0, %v874_v8  ;;  %1843 = vrcp.f32 %v2634_v7  ;;  %v968_v52 = vmul.f32 %v2418_v47, %v2632_v42 }
 0x1ff   : > { %v1832_v48 = vpop.eup %1831  ;;  %v905_v36 = vsub.f32 2.0, %v873_v17  ;;  %1845 = vrcp.f32 %v2636_v39  ;;  %v967_v30 = vmul.f32 %v2420_v60, %v2639_v32 }
 0x200   : > { %v1834_v28 = vpop.eup %1833  ;;  %v876_v13 = vmul.f32 %v1832_v48, %v803_v38  ;;  %1000 = vst [vmem:[%s2547_s26 + $0x90] sm:$0xff] %v968_v52  ;;  %v2648_v26 = vmul.f32 %v1828_v31, %v906_v50 }
 0x201   : > { %v875_v2 = vmul.f32 %v1834_v28, %v801_v15  ;;  %v2650_v22 = vpop.xlane.xlu1 %818  ;;  %v2652_v63 = vpop.xlane.xlu0 %816  ;;  %999 = vst [vmem:[%s2547_s26 + $0x88] sm:$0xff] %v967_v30  ;;  %v2655_v47 = vmul.f32 %v1830_v16, %v905_v36 }
 0x202   : > { %v908_v59 = vsub.f32 2.0, %v876_v13  ;;  %1847 = vrcp.f32 %v2650_v22  ;;  %v970_v60 = vmul.f32 %v2426_v57, %v2648_v26 }
 0x203   : > { %v1836_v38 = vpop.eup %1835  ;;  %v907_v55 = vsub.f32 2.0, %v875_v2  ;;  %1849 = vrcp.f32 %v2652_v63  ;;  %v969_v15 = vmul.f32 %v2428_v18, %v2655_v47 }
 0x204   : > { %v1838_v58 = vpop.eup %1837  ;;  %v878_v21 = vmul.f32 %v1836_v38, %v807_v46  ;;  %1002 = vst [vmem:[%s2547_s26 + $0xa0] sm:$0xff] %v970_v60  ;;  %v2664_v33 = vmul.f32 %v1832_v48, %v908_v59 }
 0x205   : > { %v877_v31 = vmul.f32 %v1838_v58, %v805_v37  ;;  %v1053_v10 = vpop.xlane.xlu1 %1052  ;;  %v2666_v35 = vpop.xlane.xlu0 %820  ;;  %1001 = vst [vmem:[%s2547_s26 + $0x98] sm:$0xff] %v969_v15  ;;  %v2669_v57 = vmul.f32 %v1834_v28, %v907_v55 }
 0x206   : > { %v910_v16 = vsub.f32 2.0, %v878_v21  ;;  %v1116_v8 = vmul.f32 %v1053_v10, %v2542_v49  ;;  %1851 = vrcp.f32 %v2666_v35  ;;  %v972_v18 = vmul.f32 %v2434_v51, %v2664_v33 }
 0x207   : > { %v1840_v46 = vpop.eup %1839  ;;  %v909_v17 = vsub.f32 2.0, %v877_v31  ;;  %v971_v37 = vmul.f32 %v2436_v29, %v2669_v57 }
 0x208   : > { %v1842_v50 = vpop.eup %1841  ;;  %v880_v52 = vmul.f32 %v1840_v46, %v811_v62  ;;  %1149 = vst.msk [vmem:[%s2678_s27] sm:$0xff] %vm1148_vm1, %v1116_v8  ;;  %1004 = vst [vmem:[%s2547_s26 + $0xb0] sm:$0xff] %v972_v18  ;;  %v2683_v49 = vmul.f32 %v1836_v38, %v910_v16 }
 0x209   : > { %v879_v48 = vmul.f32 %v1842_v50, %v2621_v9  ;;  %v1057_v51 = vpop.xlane.xlu1 %1056  ;;  %v1055_v36 = vpop.xlane.xlu0 %1054  ;;  %1003 = vst [vmem:[%s2547_s26 + $0xa8] sm:$0xff] %v971_v37  ;;  %v2687_v30 = vmul.f32 %v1838_v58, %v909_v17 }
 0x20a   : > { %v912_v29 = vsub.f32 2.0, %v880_v52  ;;  %v1118_v62 = vmul.f32 %v1057_v51, %v2552_v5  ;;  %v1117_v28 = vmul.f32 %v1055_v36, %v2550_v1  ;;  %v974_v13 = vmul.f32 %v2441_v56, %v2683_v49 }
 0x20b   : > { %v1844_v2 = vpop.eup %1843  ;;  %v911_v59 = vsub.f32 2.0, %v879_v48  ;;  %v973_v9 = vmul.f32 %v2443_v43, %v2687_v30 }
 0x20c   : > { %v1846_v60 = vpop.eup %1845  ;;  %v882_v38 = vmul.f32 %v1844_v2, %v2634_v7  ;;  %1151 = vst.msk [vmem:[%s2678_s27 + $0x10] sm:$0xff] %vm1148_vm1, %v1118_v62  ;;  %1150 = vst.msk [vmem:[%s2678_s27 + $0x8] sm:$0xff] %vm1148_vm1, %v1117_v28  ;;  %v2701_v5 = vmul.f32 %v1840_v46, %v912_v29 }
 0x20d   : > { %1006 = vst [vmem:[%s2547_s26 + $0xc0] sm:$0xff] %v974_v13  ;;  %v881_v1 = vmul.f32 %v1846_v60, %v2636_v39  ;;  %v1061_v56 = vpop.xlane.xlu1 %1060  ;;  %v1059_v55 = vpop.xlane.xlu0 %1058  ;;  %1005 = vst [vmem:[%s2547_s26 + $0xb8] sm:$0xff] %v973_v9  ;;  %v2705_v15 = vmul.f32 %v1842_v50, %v911_v59 }
 0x20e   : > { %v914_v43 = vsub.f32 2.0, %v882_v38  ;;  %v1120_v7 = vmul.f32 %v1061_v56, %v2560_v23  ;;  %v1119_v58 = vmul.f32 %v1059_v55, %v2562_v27  ;;  %v976_v21 = vmul.f32 %v2447_v11, %v2701_v5 }
 0x20f   : > { %v1848_v31 = vpop.eup %1847  ;;  %v913_v10 = vsub.f32 2.0, %v881_v1  ;;  %v975_v39 = vmul.f32 %v2449_v12, %v2705_v15 }
 0x210   : > { %v1850_v16 = vpop.eup %1849  ;;  %v884_v8 = vmul.f32 %v1848_v31, %v2650_v22  ;;  %1153 = vst.msk [vmem:[%s2678_s27 + $0x20] sm:$0xff] %vm1148_vm1, %v1120_v7  ;;  %1152 = vst.msk [vmem:[%s2678_s27 + $0x18] sm:$0xff] %vm1148_vm1, %v1119_v58  ;;  %v2719_v23 = vmul.f32 %v1844_v2, %v914_v43 }
 0x211   : > { %1008 = vst [vmem:[%s2547_s26 + $0xd0] sm:$0xff] %v976_v21  ;;  %v883_v11 = vmul.f32 %v1850_v16, %v2652_v63  ;;  %v1065_v27 = vpop.xlane.xlu1 %1064  ;;  %v1063_v18 = vpop.xlane.xlu0 %1062  ;;  %1007 = vst [vmem:[%s2547_s26 + $0xc8] sm:$0xff] %v975_v39  ;;  %v2723_v12 = vmul.f32 %v1846_v60, %v913_v10 }
 0x212   : > { %v916_v46 = vsub.f32 2.0, %v884_v8  ;;  %v1122_v22 = vmul.f32 %v1065_v27, %v2569_v53  ;;  %v1121_v17 = vmul.f32 %v1063_v18, %v2572_v4  ;;  %v978_v37 = vmul.f32 %v2453_v44, %v2719_v23 }
 0x213   : > { %v1852_v50 = vpop.eup %1851  ;;  %v915_v52 = vsub.f32 2.0, %v883_v11  ;;  %v977_v63 = vmul.f32 %v2455_v24, %v2723_v12 }
 0x214   : > { %v885_v48 = vmul.f32 %v1852_v50, %v2666_v35  ;;  %1155 = vst.msk [vmem:[%s2678_s27 + $0x30] sm:$0xff] %vm1148_vm1, %v1122_v22  ;;  %1154 = vst.msk [vmem:[%s2678_s27 + $0x28] sm:$0xff] %vm1148_vm1, %v1121_v17  ;;  %v2737_v53 = vmul.f32 %v1848_v31, %v916_v46 }
 0x215   : > { %1010 = vst [vmem:[%s2547_s26 + $0xe0] sm:$0xff] %v978_v37  ;;  %v1069_v4 = vpop.xlane.xlu1 %1068  ;;  %v1067_v44 = vpop.xlane.xlu0 %1066  ;;  %1009 = vst [vmem:[%s2547_s26 + $0xd8] sm:$0xff] %v977_v63  ;;  %v2740_v51 = vmul.f32 %v1850_v16, %v915_v52 }
 0x216   : > { %v917_v36 = vsub.f32 2.0, %v885_v48  ;;  %v1124_v24 = vmul.f32 %v1069_v4, %v2579_v45  ;;  %v1123_v35 = vmul.f32 %v1067_v44, %v2582_v25  ;;  %v980_v29 = vmul.f32 %v2459_v6, %v2737_v53 }
 0x217   : > { %v979_v62 = vmul.f32 %v2461_v3, %v2740_v51 }
 0x218   : > { %1157 = vst.msk [vmem:[%s2678_s27 + $0x40] sm:$0xff] %vm1148_vm1, %v1124_v24  ;;  %1156 = vst.msk [vmem:[%s2678_s27 + $0x38] sm:$0xff] %vm1148_vm1, %v1123_v35  ;;  %v2753_v28 = vmul.f32 %v1852_v50, %v917_v36 }
 0x219   : > { %1012 = vst [vmem:[%s2547_s26 + $0xf0] sm:$0xff] %v980_v29  ;;  %v1073_v13 = vpop.xlane.xlu1 %1072  ;;  %v1071_v45 = vpop.xlane.xlu0 %1070  ;;  %1011 = vst [vmem:[%s2547_s26 + $0xe8] sm:$0xff] %v979_v62 }
 0x21a   : > { %v1126_v25 = vmul.f32 %v1073_v13, %v2589_v19  ;;  %v1125_v6 = vmul.f32 %v1071_v45, %v2592_v54  ;;  %v981_v3 = vmul.f32 %v2470_v20, %v2753_v28 }
 0x21c   : > { %1159 = vst.msk [vmem:[%s2678_s27 + $0x50] sm:$0xff] %vm1148_vm1, %v1126_v25  ;;  %1158 = vst.msk [vmem:[%s2678_s27 + $0x48] sm:$0xff] %vm1148_vm1, %v1125_v6 }
 0x21d   : > { %1013 = vst [vmem:[%s2547_s26 + $0xf8] sm:$0xff] %v981_v3  ;;  %v1077_v2 = vpop.xlane.xlu1 %1076  ;;  %v1075_v59 = vpop.xlane.xlu0 %1074 }
 0x21e   : > { %v1128_v9 = vmul.f32 %v1077_v2, %v2599_v61  ;;  %v1127_v19 = vmul.f32 %v1075_v59, %v2602_v14 }
 0x220   : > { %1161 = vst.msk [vmem:[%s2678_s27 + $0x60] sm:$0xff] %vm1148_vm1, %v1128_v9  ;;  %1160 = vst.msk [vmem:[%s2678_s27 + $0x58] sm:$0xff] %vm1148_vm1, %v1127_v19 }
 0x221   : > { %v1081_v54 = vpop.xlane.xlu1 %1080  ;;  %v1079_v20 = vpop.xlane.xlu0 %1078 }
 0x222   : > { %v1130_v60 = vmul.f32 %v1081_v54, %v2609_v41  ;;  %v1129_v38 = vmul.f32 %v1079_v20, %v2612_v40 }
 0x224   : > { %1163 = vst.msk [vmem:[%s2678_s27 + $0x70] sm:$0xff] %vm1148_vm1, %v1130_v60  ;;  %1162 = vst.msk [vmem:[%s2678_s27 + $0x68] sm:$0xff] %vm1148_vm1, %v1129_v38 }
 0x225   : > { %v1085_v1 = vpop.xlane.xlu1 %1084  ;;  %v1083_v61 = vpop.xlane.xlu0 %1082 }
 0x226   : > { %v1132_v14 = vmul.f32 %v1085_v1, %v2619_v0  ;;  %v1131_v56 = vmul.f32 %v1083_v61, %v2624_v34 }
 0x228   : > { %1165 = vst.msk [vmem:[%s2678_s27 + $0x80] sm:$0xff] %vm1148_vm1, %v1132_v14  ;;  %1164 = vst.msk [vmem:[%s2678_s27 + $0x78] sm:$0xff] %vm1148_vm1, %v1131_v56 }
 0x229   : > { %v1089_v55 = vpop.xlane.xlu1 %1088  ;;  %v1087_v41 = vpop.xlane.xlu0 %1086 }
 0x22a   : > { %v1134_v40 = vmul.f32 %v1089_v55, %v2632_v42  ;;  %v1133_v43 = vmul.f32 %v1087_v41, %v2639_v32 }
 0x22c   : > { %1167 = vst.msk [vmem:[%s2678_s27 + $0x90] sm:$0xff] %vm1148_vm1, %v1134_v40  ;;  %1166 = vst.msk [vmem:[%s2678_s27 + $0x88] sm:$0xff] %vm1148_vm1, %v1133_v43 }
 0x22d   : > { %v1093_v7 = vpop.xlane.xlu1 %1092  ;;  %v1091_v0 = vpop.xlane.xlu0 %1090 }
 0x22e   : > { %v1136_v34 = vmul.f32 %v1093_v7, %v2648_v26  ;;  %v1135_v58 = vmul.f32 %v1091_v0, %v2655_v47 }
 0x230   : > { %1169 = vst.msk [vmem:[%s2678_s27 + $0xa0] sm:$0xff] %vm1148_vm1, %v1136_v34  ;;  %1168 = vst.msk [vmem:[%s2678_s27 + $0x98] sm:$0xff] %vm1148_vm1, %v1135_v58 }
 0x231   : > { %v1097_v21 = vpop.xlane.xlu1 %1096  ;;  %v1095_v42 = vpop.xlane.xlu0 %1094 }
 0x232   : > { %v1138_v32 = vmul.f32 %v1097_v21, %v2664_v33  ;;  %v1137_v31 = vmul.f32 %v1095_v42, %v2669_v57 }
 0x234   : > { %1171 = vst.msk [vmem:[%s2678_s27 + $0xb0] sm:$0xff] %vm1148_vm1, %v1138_v32  ;;  %1170 = vst.msk [vmem:[%s2678_s27 + $0xa8] sm:$0xff] %vm1148_vm1, %v1137_v31 }
 0x235   : > { %v1101_v10 = vpop.xlane.xlu1 %1100  ;;  %v1099_v26 = vpop.xlane.xlu0 %1098 }
 0x236   : > { %v1140_v47 = vmul.f32 %v1101_v10, %v2683_v49  ;;  %v1139_v39 = vmul.f32 %v1099_v26, %v2687_v30 }
 0x238   : > { %1173 = vst.msk [vmem:[%s2678_s27 + $0xc0] sm:$0xff] %vm1148_vm1, %v1140_v47  ;;  %1172 = vst.msk [vmem:[%s2678_s27 + $0xb8] sm:$0xff] %vm1148_vm1, %v1139_v39 }
 0x239   : > { %v1105_v16 = vpop.xlane.xlu1 %1104  ;;  %v1103_v33 = vpop.xlane.xlu0 %1102 }
 0x23a   : > { %v1142_v57 = vmul.f32 %v1105_v16, %v2701_v5  ;;  %v1141_v8 = vmul.f32 %v1103_v33, %v2705_v15 }
 0x23c   : > { %1175 = vst.msk [vmem:[%s2678_s27 + $0xd0] sm:$0xff] %vm1148_vm1, %v1142_v57  ;;  %1174 = vst.msk [vmem:[%s2678_s27 + $0xc8] sm:$0xff] %vm1148_vm1, %v1141_v8 }
 0x23d   : > { %v1109_v49 = vpop.xlane.xlu1 %1108  ;;  %v1107_v30 = vpop.xlane.xlu0 %1106 }
 0x23e   : > { %v1144_v11 = vmul.f32 %v1109_v49, %v2719_v23  ;;  %v1143_v27 = vmul.f32 %v1107_v30, %v2723_v12 }
 0x240   : > { %1177 = vst.msk [vmem:[%s2678_s27 + $0xe0] sm:$0xff] %vm1148_vm1, %v1144_v11  ;;  %1176 = vst.msk [vmem:[%s2678_s27 + $0xd8] sm:$0xff] %vm1148_vm1, %v1143_v27 }
 0x241   : > { %v1113_v18 = vpop.xlane.xlu1 %1112  ;;  %v1111_v5 = vpop.xlane.xlu0 %1110 }
 0x242   : > { %v1146_v15 = vmul.f32 %v1113_v18, %v2737_v53  ;;  %v1145_v46 = vmul.f32 %v1111_v5, %v2740_v51 }
 0x244   : > { %1179 = vst.msk [vmem:[%s2678_s27 + $0xf0] sm:$0xff] %vm1148_vm1, %v1146_v15  ;;  %1178 = vst.msk [vmem:[%s2678_s27 + $0xe8] sm:$0xff] %vm1148_vm1, %v1145_v46  ;;  %1192 = sbr.rel (!%p2054_p5) target bundleno = 633 (0x279), region = 40 }
 0x245   : > { %v1115_v22 = vpop.xlane.xlu0 %1114 }
 0x246   : > { %v1147_v17 = vmul.f32 %v1115_v22, %v2753_v28 }
 0x248   : > { %1180 = vst.msk [vmem:[%s2678_s27 + $0xf8] sm:$0xff] %vm1148_vm1, %v1147_v17 }
 0x249   : > { %s3041_s8 = smov (!%p1195_p11, %s1194_s8), 32 }
 0x24a   : > { %s1593_s13 = sshll.u32 %s3041_s8, 7 }
 0x24b   : > { %p1596_p12 = scmp.eq.s32.totalorder %s1593_s13, 0 }
 0x24c   : > { %s2845_s14 = sshrl.u32 (!%p1596_p12), %s3041_s8, 5 }
 0x24d   : > { %1203 = sbr.rel (%p1596_p12) target bundleno = 633 (0x279), region = 44  ;;  %p1597_p13 = scmp.le.s32.totalorder (!%p1596_p12), %s2845_s14, 0 }
 0x252   : > { %1527 = sbr.rel (%p1597_p13) target bundleno = 616 (0x268), region = 137  ;;  %s3031_s15 = smov (!%p1597_p13), %s2839_s12 }
 0x253   : > { %s3032_s16 = smov (!%p1597_p13), %s2678_s27  ;;  %s2854_s17 = smov (!%p1597_p13), 0  }
 0x254   : > { %s2856_s18 = smov (!%p1597_p13), 0  }
 0x257 LB: >> { %v1328_v23 = vld [vmem:[%s1953_s16] sm:$0xff]  ;;  %v1330_v12 = vld [vmem:[%s1953_s16 + $0x8] sm:$0xff]  ;;  %v1332_v37 = vld [vmem:[%s1953_s16 + $0x10] sm:$0xff]  ;;  %s1392_s19 = sadd.s32 1, %s1957_s17  ;;  %s1322_s18 = sadd.s32 1, %s1961_s18   ;;  %s1961_s18 = sphi %s2856_s18, %s1322_s18   ;;  %s1957_s17 = sphi %s2854_s17, %s3035_s17   ;;  %s1953_s16 = sphi %s3032_s16, %s3034_s16   ;;  %s1949_s15 = sphi %s3031_s15, %s3033_s15  }
 0x258   : >> { %1329 = vst [vmem:[%s1949_s15] sm:$0xff] %v1328_v23  ;;  %1331 = vst [vmem:[%s1949_s15 + $0x8] sm:$0xff] %v1330_v12  ;;  %v1334_v50 = vld [vmem:[%s1953_s16 + $0x18] sm:$0xff]  ;;  %v1336_v52 = vld [vmem:[%s1953_s16 + $0x20] sm:$0xff]  ;;  %p1393_p0 = scmp.ge.s32.totalorder %s1392_s19, %s2845_s14  ;;  %p1321_p1 = scmp.ge.s32.totalorder %s1322_s18, %s2845_s14 }
 0x259   : >> { %1333 = vst [vmem:[%s1949_s15 + $0x10] sm:$0xff] %v1332_v37  ;;  %v1338_v63 = vld [vmem:[%s1953_s16 + $0x28] sm:$0xff]  ;;  %1335 = vst [vmem:[%s1949_s15 + $0x18] sm:$0xff] %v1334_v50  ;;  %v1340_v48 = vld [vmem:[%s1953_s16 + $0x30] sm:$0xff] }
 0x25a   : >> { %1337 = vst [vmem:[%s1949_s15 + $0x20] sm:$0xff] %v1336_v52  ;;  %1339 = vst [vmem:[%s1949_s15 + $0x28] sm:$0xff] %v1338_v63  ;;  %v1342_v53 = vld [vmem:[%s1953_s16 + $0x38] sm:$0xff]  ;;  %v1344_v4 = vld [vmem:[%s1953_s16 + $0x40] sm:$0xff]  ;;  %s3043_s19 = smov (%p1393_p0, %s1392_s19), 0 }
 0x25b   : >> { %1341 = vst [vmem:[%s1949_s15 + $0x30] sm:$0xff] %v1340_v48  ;;  %1343 = vst [vmem:[%s1949_s15 + $0x38] sm:$0xff] %v1342_v53  ;;  %v1346_v44 = vld [vmem:[%s1953_s16 + $0x48] sm:$0xff]  ;;  %v1348_v51 = vld [vmem:[%s1953_s16 + $0x50] sm:$0xff]  ;;  %s1598_s24 = sshll.u32 %s3043_s19, 8  ;;  %s3035_s17 = smov %s3043_s19 }
 0x25c   : >> { %1345 = vst [vmem:[%s1949_s15 + $0x40] sm:$0xff] %v1344_v4  ;;  %v1350_v36 = vld [vmem:[%s1953_s16 + $0x58] sm:$0xff]  ;;  %1347 = vst [vmem:[%s1949_s15 + $0x48] sm:$0xff] %v1346_v44  ;;  %v1352_v24 = vld [vmem:[%s1953_s16 + $0x60] sm:$0xff]  ;;  %s2912_s9 = scalar_lea.vmem %s2678_s27, %s1598_s24 [#allocation3]   ;;  %s1398_s10 = scalar_lea.vmem %s2839_s12, %s1598_s24  }
 0x25d   : >> { %1349 = vst [vmem:[%s1949_s15 + $0x50] sm:$0xff] %v1348_v51  ;;  %1351 = vst [vmem:[%s1949_s15 + $0x58] sm:$0xff] %v1350_v36  ;;  %v1354_v35 = vld [vmem:[%s1953_s16 + $0x68] sm:$0xff]  ;;  %v1356_v29 = vld [vmem:[%s1953_s16 + $0x70] sm:$0xff] }
 0x25e   : >> { %1353 = vst [vmem:[%s1949_s15 + $0x60] sm:$0xff] %v1352_v24  ;;  %1355 = vst [vmem:[%s1949_s15 + $0x68] sm:$0xff] %v1354_v35  ;;  %v1358_v62 = vld [vmem:[%s1953_s16 + $0x78] sm:$0xff]  ;;  %v1360_v28 = vld [vmem:[%s1953_s16 + $0x80] sm:$0xff] }
 0x25f   : >> { %1357 = vst [vmem:[%s1949_s15 + $0x70] sm:$0xff] %v1356_v29  ;;  %v1362_v13 = vld [vmem:[%s1953_s16 + $0x88] sm:$0xff]  ;;  %1359 = vst [vmem:[%s1949_s15 + $0x78] sm:$0xff] %v1358_v62  ;;  %v1364_v45 = vld [vmem:[%s1953_s16 + $0x90] sm:$0xff] }
 0x260   : >> { %1361 = vst [vmem:[%s1949_s15 + $0x80] sm:$0xff] %v1360_v28  ;;  %1363 = vst [vmem:[%s1949_s15 + $0x88] sm:$0xff] %v1362_v13  ;;  %v1366_v25 = vld [vmem:[%s1953_s16 + $0x98] sm:$0xff]  ;;  %v1368_v6 = vld [vmem:[%s1953_s16 + $0xa0] sm:$0xff] }
 0x261   : >> { %1365 = vst [vmem:[%s1949_s15 + $0x90] sm:$0xff] %v1364_v45  ;;  %1367 = vst [vmem:[%s1949_s15 + $0x98] sm:$0xff] %v1366_v25  ;;  %v1370_v3 = vld [vmem:[%s1953_s16 + $0xa8] sm:$0xff]  ;;  %v1372_v2 = vld [vmem:[%s1953_s16 + $0xb0] sm:$0xff] }
 0x262   : >> { %1369 = vst [vmem:[%s1949_s15 + $0xa0] sm:$0xff] %v1368_v6  ;;  %v1374_v59 = vld [vmem:[%s1953_s16 + $0xb8] sm:$0xff]  ;;  %1371 = vst [vmem:[%s1949_s15 + $0xa8] sm:$0xff] %v1370_v3  ;;  %v1376_v9 = vld [vmem:[%s1953_s16 + $0xc0] sm:$0xff] }
 0x263   : >> { %1373 = vst [vmem:[%s1949_s15 + $0xb0] sm:$0xff] %v1372_v2  ;;  %1375 = vst [vmem:[%s1949_s15 + $0xb8] sm:$0xff] %v1374_v59  ;;  %v1378_v19 = vld [vmem:[%s1953_s16 + $0xc8] sm:$0xff]  ;;  %v1380_v54 = vld [vmem:[%s1953_s16 + $0xd0] sm:$0xff]  ;;  %1324 = sbr.rel (!%p1321_p1) target bundleno = 599 (0x257), region = 143 }
 0x264   : >> { %1377 = vst [vmem:[%s1949_s15 + $0xc0] sm:$0xff] %v1376_v9  ;;  %1379 = vst [vmem:[%s1949_s15 + $0xc8] sm:$0xff] %v1378_v19  ;;  %v1382_v20 = vld [vmem:[%s1953_s16 + $0xd8] sm:$0xff]  ;;  %v1384_v60 = vld [vmem:[%s1953_s16 + $0xe0] sm:$0xff] }
 0x265   : >> { %1381 = vst [vmem:[%s1949_s15 + $0xd0] sm:$0xff] %v1380_v54  ;;  %v1386_v38 = vld [vmem:[%s1953_s16 + $0xe8] sm:$0xff]  ;;  %1383 = vst [vmem:[%s1949_s15 + $0xd8] sm:$0xff] %v1382_v20  ;;  %v1388_v1 = vld [vmem:[%s1953_s16 + $0xf0] sm:$0xff] }
 0x266   : >> { %1385 = vst [vmem:[%s1949_s15 + $0xe0] sm:$0xff] %v1384_v60  ;;  %1387 = vst [vmem:[%s1949_s15 + $0xe8] sm:$0xff] %v1386_v38  ;;  %v1390_v61 = vld [vmem:[%s1953_s16 + $0xf8] sm:$0xff]  ;;  %s3034_s16 = smov %s2912_s9 }
 0x267   : >> { %1389 = vst [vmem:[%s1949_s15 + $0xf0] sm:$0xff] %v1388_v1  ;;  %1391 = vst [vmem:[%s1949_s15 + $0xf8] sm:$0xff] %v1390_v61  ;;  %s3033_s15 = smov %s1398_s10 }
 0x268 PF: > { %s2953_s11 = sand.u32 31, %s3041_s8   ;;  %s1615_s13 = sshll.u32 %s2845_s14, 8 }
 0x269   : > { %s1403_s24 = scalar_lea.vmem %s2678_s27, %s1615_s13 [#allocation3]   ;;  %s1405_s1 = scalar_lea.vmem %s2839_s12, %s1615_s13  }
 0x26a   : > { %p1603_p2 = scmp.le.s32.totalorder %s2953_s11, 0 }
 0x26b   : > { %s1963_s10 = smov (!%p1603_p2), %s1405_s1   ;;  %s1967_s9 = smov (!%p1603_p2), %s1403_s24  }
 0x26c   : > { %1541 = sbr.rel (%p1603_p2) target bundleno = 633 (0x279), region = 148  ;;  %s1971_s2 = smov (!%p1603_p2), 0  }
 0x26d   : > { %s1975_s19 = smov (!%p1603_p2), 0  }
 0x271 LB: >> { %v1415_v14 = vld [vmem:[%s1969_s9] sm:$0xff]  ;;  %s1417_s8 = sadd.s32 1, %s1973_s2  ;;  %s1409_s19 = sadd.s32 1, %s1977_s19   ;;  %s1977_s19 = sphi %s1975_s19, %s1409_s19   ;;  %s1973_s2 = sphi %s1971_s2, %s1972_s2   ;;  %s1969_s9 = sphi %s1967_s9, %s1422_s9   ;;  %s1965_s10 = sphi %s1963_s10, %s1423_s10  }
 0x272   : >> { %1416 = vst [vmem:[%s1965_s10] sm:$0xff] %v1415_v14  ;;  %p1418_p3 = scmp.ge.s32.totalorder %s1417_s8, %s2953_s11  ;;  %p1408_p4 = scmp.ge.s32.totalorder %s1409_s19, %s2953_s11 }
 0x274   : >> { %s3045_s8 = smov (%p1418_p3, %s1417_s8), 0  ;;  %1411 = sbr.rel (!%p1408_p4) target bundleno = 625 (0x271), region = 154 }
 0x275   : >> { %s1604_s27 = sshll.u32 %s3045_s8, 3  ;;  %s1972_s2 = smov %s3045_s8  }
 0x276   : >> { %s1422_s9 = scalar_lea.vmem %s1403_s24, %s1604_s27 [#allocation3]   ;;  %s1423_s10 = scalar_lea.vmem %s1405_s1, %s1604_s27  }
 0x279 PF: > { %1429 = sbr.rel (!%p2054_p5) target bundleno = 665 (0x299), region = 92  ;;  %s1431_s2 = ssub.s32 (%p2054_p5), 75, %s2065_s6 }
 0x27a   : > { %p1432_p7 = scmp.lt.s32.totalorder (%p2054_p5), %s1431_s2, 32 }
 0x27e   : > { %s3047_s2 = smov (!%p1432_p7, %s1431_s2), 32 }
 0x27f   : > { %s2964_s12 = sshll.u32 %s3047_s2, 7 }
 0x280   : > { %s1436_s14 = ssub.s32 4096, %s2964_s12 }
 0x281   : > { %1437 = vsyncadd %s2830_s7, %s1436_s14  ;;  %p1608_p8 = scmp.ne.s32.totalorder %s2964_s12, 0  ;;  %s1617_s1 = sshll.u32 %s2037_s0, 12 }
 0x282   : > { %s2973_s16 = scalar_lea.hbm %s3024_s5, %s1617_s1  ;;  %s1442_s6 = sshll.u32 %s2547_s26, 4  ;;  %s2976_s6 = int_to_ptr.vmem [resolvable:$true] %s1442_s6 }
 0x283   : > { %s1853_s17 = scalar_lea.vmem %s2976_s6, %s2964_s12  ;;  %s1980_s18 = smov [#allocation4]  }
 0x284   : > { %p1854_p5 = scmp.ne.s32.totalorder %s2976_s6, %s1853_s17  ;;  %s1857_s11 = sshll.u32 %s1980_s18, 4  ;;  %s1858_s11 = int_to_ptr.vmem [resolvable:$false] %s1857_s11 }
 0x285   : > { %s1859_s0 = scalar_lea.vmem %s1858_s11, 8192  ;;  %p1860_p11 = scmp.lt.s32.totalorder %s2976_s6, %s1858_s11 }
 0x286   : > { %p1855_p9 = pnand %p1854_p5, %p1608_p8  ;;  %p1861_p12 = scmp.lt.s32.totalorder %s1859_s0, %s1853_s17 }
 0x288   : > { %p1856_p10 = pneg %p1855_p9  ;;  %p1862_p13 = por %p1861_p12, %p1860_p11 }
 0x28a   : > { %p1863_p0 = pnand %p1862_p13, %p1856_p10 }
 0x28c   : > { %1866 = shalt.err (!%p1863_p0)
}
 0x28d   : > { %s1867_s26 = scalar_lea.hbm %s2973_s16, %s2964_s12  ;;  %s1871_s10 = scalar_lea.hbm %s3024_s5, 9600 }
 0x28e   : > { %p1868_p1 = scmp.ne.s32.totalorder %s2973_s16, %s1867_s26  ;;  %p1872_p4 = scmp.lt.s32.totalorder %s2973_s16, %s3024_s5 }
 0x28f   : > { %p1873_p7 = scmp.lt.s32.totalorder %s1871_s10, %s1867_s26 }
 0x290   : > { %p1869_p2 = pnand %p1868_p1, %p1608_p8 }
 0x291   : > { %p1874_p5 = por %p1873_p7, %p1872_p4 }
 0x292   : > { %p1870_p3 = pneg %p1869_p2 }
 0x294   : > { %p1875_p9 = pnand %p1874_p5, %p1870_p3 }
 0x296   : > { %1878 = shalt.err (!%p1875_p9)
}
 0x297   : > { %s1981_s8 = smov 128   ;;  %s1982_s27 = smov 8  }
 0x298   : > { %1448 = dma.vmem_to_hbm [thread:$0]  (%p1608_p8), %s2976_s6, %s2964_s12, %s2973_s16, %s2830_s7, %s1981_s8, %s1981_s8, %s1982_s27  }
 0x299 PF: > { %p1623_p10 = scmp.ge.s32.totalorder %s1945_s23, 2  ;;  %s1464_s2 = sand.u32 1, %s1933_s20  }
 0x29a   : > { %s1465_s14 = scalar_lea.sflag [#allocation5], %s1464_s2 }
 0x29b   : > { %p1620_p11 = pnand %p1623_p10, %p2058_p6 }
 0x29d   : > { %p1621_p12 = pneg %p1620_p11 }
 0x29f   : > { %1928 = dma.done.wait (%p1621_p12), %s1465_s14, 4096  }
 0x2a0   : > { %1930 = vsyncadd (%p1621_p12), %s1465_s14, 4294963200  ;;  %p17_p13 = scmp.ge.s32.totalorder %s2041_s25, 5   ;;  %s3036_s20 = smov %s1937_s21 }
 0x2a1   : > { %s3037_s21 = smov %s1941_s22  ;;  %s3038_s22 = smov %s2052_s28 }
 0x2a2   : > { %s3039_s23 = smov %s2041_s25  ;;  %19 = sbr.rel (!%p17_p13) target bundleno = 7 (0x7), region = 165 }
 0x2a7   :  { %1470 = vsyncpa [#allocation5], 1 }
 0x2a8   :  { %1472 = vsyncpa [#allocation5 + $0x1], 1 }

</bundles_post_ra>
